<compile_context>
chip_gen: v7x
topology: tpu7x:2x2x1
jax: 0.10.0
libtpu: 0.0.40
codegen_flags: <defaults>
</compile_context>

<pallas_src>
import math

import jax
import jax.numpy as jnp
from jax.experimental import pallas as pl
from jax.experimental.pallas import tpu as pltpu


def _round_up(x, m):
    return ((x + m - 1) // m) * m


def _pick_chunk(n, cap=16):
    """Largest divisor of n that is <= cap (timesteps per grid iteration)."""
    for c in range(min(n, cap), 0, -1):
        if n % c == 0:
            return c
    return 1


def _pick_batch_tile(b_pad, cap=256):
    """Batch-tile size (multiple of 8 dividing b_pad)."""
    if b_pad <= cap:
        return b_pad
    for c in range(cap, 7, -8):
        if b_pad % c == 0:
            return c
    return 8  # b_pad is always a multiple of 8


def _make_layer_kernel(t_chunk, b_tile, d_pad, h_pad):
    """One stacked-LSTM layer; grid = (batch_tile, seq_chunk)."""

    def sig(v):
        # sigmoid via tanh: one EUP push instead of exp + reciprocal.
        return 0.5 * jnp.tanh(0.5 * v) + 0.5

    def kernel(x_ref, wih_ref, whh_ref, out_ref, hN_ref, cN_ref, h_s, c_s):
        t = pl.program_id(1)

        # Zero-init hidden/cell state at the first chunk of each batch tile
        # (matches RNNCell.init_hidden's zero tensors).
        @pl.when(t == 0)
        def _():
            h_s[...] = jnp.zeros_like(h_s)
            c_s[...] = jnp.zeros_like(c_s)

        # Hoisted input-to-hidden GEMM for the whole chunk:
        # (t_chunk*b_tile, d_pad) @ (d_pad, 4*h_pad) -- big-M MXU work,
        # off the per-timestep sequential path.
        x2d = x_ref[...].reshape(t_chunk * b_tile, d_pad).astype(jnp.bfloat16)
        pre_g = jnp.dot(x2d, wih_ref[...], preferred_element_type=jnp.float32)

        w_hh = whh_ref[...]          # bf16 [h_pad, 4*h_pad]
        h = h_s[...]                 # f32  [b_tile, h_pad]
        c = c_s[...]                 # f32  [b_tile, h_pad]

        for i in range(t_chunk):     # static unroll inside one grid step
            gates = pre_g[i * b_tile:(i + 1) * b_tile, :] + jnp.dot(
                h.astype(jnp.bfloat16), w_hh, preferred_element_type=jnp.float32)
            # PyTorch LSTMCell gate order: i, f, g, o (lane-aligned slices).
            i_g = sig(gates[:, 0 * h_pad:1 * h_pad])
            f_g = sig(gates[:, 1 * h_pad:2 * h_pad])
            g_g = jnp.tanh(gates[:, 2 * h_pad:3 * h_pad])
            o_g = sig(gates[:, 3 * h_pad:4 * h_pad])
            c = f_g * c + i_g * g_g
            h = o_g * jnp.tanh(c)
            out_ref[i] = h.astype(out_ref.dtype)

        h_s[...] = h
        c_s[...] = c

        # At the final chunk, emit the final (h, c) of this layer / batch tile.
        @pl.when(t == pl.num_programs(1) - 1)
        def _():
            hN_ref[...] = h.astype(hN_ref.dtype)
            cN_ref[...] = c.astype(cN_ref.dtype)

    return kernel


def _run_layer(x_p, w_ih_t, w_hh_t, h_pad, t_chunk, b_tile):
    """Runs one layer's full recurrence in a single pallas_call."""
    s, b_pad, d_pad = x_p.shape
    g = 4 * h_pad
    n_b = b_pad // b_tile
    n_t = s // t_chunk

    kernel = _make_layer_kernel(t_chunk, b_tile, d_pad, h_pad)

    # VMEM budget: double-buffered blocks + temps, with generous headroom.
    est = 2 * 2 * (d_pad * g + h_pad * g)               # bf16 weights, 2 bufs
    est += 2 * 4 * t_chunk * b_tile * (d_pad + h_pad)   # x / out blocks, 2 bufs
    est += 4 * 4 * b_tile * h_pad * 2                   # hN / cN blocks
    est += 2 * 4 * b_tile * h_pad                       # h / c scratch
    est += 2 * 4 * t_chunk * b_tile * g                 # pre-gates + gate temps
    vmem_limit = min(max(2 * est + (8 << 20), 32 << 20), 64 << 20)

    grid_spec = pltpu.PrefetchScalarGridSpec(
        num_scalar_prefetch=0,
        grid=(n_b, n_t),
        in_specs=[
            pl.BlockSpec((t_chunk, b_tile, d_pad), lambda bi, ti: (ti, bi, 0)),
            pl.BlockSpec((d_pad, g), lambda bi, ti: (0, 0)),   # W_ih^T (resident)
            pl.BlockSpec((h_pad, g), lambda bi, ti: (0, 0)),   # W_hh^T (resident)
        ],
        out_specs=(
            pl.BlockSpec((t_chunk, b_tile, h_pad), lambda bi, ti: (ti, bi, 0)),
            pl.BlockSpec((b_tile, h_pad), lambda bi, ti: (bi, 0)),  # final h
            pl.BlockSpec((b_tile, h_pad), lambda bi, ti: (bi, 0)),  # final c
        ),
        scratch_shapes=[
            pltpu.VMEM((b_tile, h_pad), jnp.float32),  # h state (persists)
            pltpu.VMEM((b_tile, h_pad), jnp.float32),  # c state (persists)
        ],
    )

    out_shape = (
        jax.ShapeDtypeStruct((s, b_pad, h_pad), x_p.dtype),
        jax.ShapeDtypeStruct((b_pad, h_pad), jnp.float32),
        jax.ShapeDtypeStruct((b_pad, h_pad), jnp.float32),
    )

    return pl.pallas_call(
        kernel,
        out_shape=out_shape,
        grid_spec=grid_spec,
        compiler_params=pltpu.CompilerParams(
            dimension_semantics=("parallel", "arbitrary"),
            vmem_limit_bytes=vmem_limit,
        ),
    )(x_p, w_ih_t, w_hh_t)


def stacked_lstm_forward(x, w_ih_list, w_hh_list):
    """Stacked-LSTM forward matching apex stackedRNN (default config)."""
    s, b, d_in = x.shape
    num_layers = len(w_ih_list)
    hid = w_hh_list[0].shape[1]

    h_pad = _round_up(hid, 128)     # lane-align hidden (gate slices, stores)
    b_pad = _round_up(b, 8)         # sublane-align batch
    d0_pad = _round_up(d_in, 128)
    g = 4 * h_pad

    t_chunk = _pick_chunk(s, cap=16)
    b_tile = _pick_batch_tile(b_pad)

    def pad_weight_t(w, d_real, d_padded):
        # w: [4*hid, d_real] -> padded transposed bf16 [d_padded, 4*h_pad],
        # gate k occupying columns [k*h_pad, k*h_pad + hid).
        wt = jnp.zeros((d_padded, g), jnp.float32)
        w_t = w.T.astype(jnp.float32)
        for k in range(4):
            wt = wt.at[:d_real, k * h_pad:k * h_pad + hid].set(
                w_t[:, k * hid:(k + 1) * hid])
        return wt.astype(jnp.bfloat16)

    # Zero-pad input (padded channels contribute nothing: their weight rows are 0).
    x_p = jnp.zeros((s, b_pad, d0_pad), x.dtype).at[:, :b, :d_in].set(x)

    cur = x_p
    h_fin, c_fin = [], []
    for l in range(num_layers):
        d_real = d_in if l == 0 else hid
        d_padded = d0_pad if l == 0 else h_pad
        w_ih_t = pad_weight_t(w_ih_list[l], d_real, d_padded)
        w_hh_t = pad_weight_t(w_hh_list[l], hid, h_pad)
        cur, h_n, c_n = _run_layer(cur, w_ih_t, w_hh_t, h_pad, t_chunk, b_tile)
        h_fin.append(h_n)
        c_fin.append(c_n)

    output = cur[:, :b, :hid]
    h_final = jnp.stack(h_fin)[:, :b, :hid].astype(x.dtype)
    c_final = jnp.stack(c_fin)[:, :b, :hid].astype(x.dtype)
    return output, h_final, c_final


def ref_forward(x, w_ih_list, w_hh_list):
    """Pure-JAX f32 reference matching the PyTorch stackedRNN + LSTM cell."""
    seq_len, b, _ = x.shape
    num_layers = len(w_ih_list)
    hid = w_hh_list[0].shape[1]
    h = [jnp.zeros((b, hid), jnp.float32) for _ in range(num_layers)]
    c = [jnp.zeros((b, hid), jnp.float32) for _ in range(num_layers)]
    outs = []
    for t in range(seq_len):
        prev = x[t]
        for l in range(num_layers):
            gates = prev @ w_ih_list[l].T + h[l] @ w_hh_list[l].T
            i_g, f_g, g_g, o_g = jnp.split(gates, 4, axis=-1)
            c[l] = jax.nn.sigmoid(f_g) * c[l] + jax.nn.sigmoid(i_g) * jnp.tanh(g_g)
            h[l] = jax.nn.sigmoid(o_g) * jnp.tanh(c[l])
            prev = h[l]
        outs.append(prev)
    return jnp.stack(outs), jnp.stack(h), jnp.stack(c)


if __name__ == "__main__":
    # Small deterministic example (LSTM-like cell: gate_multiplier=4, 2 hidden states)
    seq_len, batch, input_size, hidden, num_layers = 8, 2, 16, 32, 2

    key = jax.random.PRNGKey(0)
    k_x, *k_w = jax.random.split(key, 1 + 2 * num_layers)

    x = jax.random.normal(k_x, (seq_len, batch, input_size), dtype=jnp.float32)

    # RNNCell.reset_parameters: uniform(-stdev, stdev), stdev = 1/sqrt(hidden_size)
    stdev = 1.0 / math.sqrt(hidden)
    w_ih_list, w_hh_list = [], []
    for l in range(num_layers):
        d_in = input_size if l == 0 else hidden  # stackedRNN: new_like(output_size)
        w_ih_list.append(
            jax.random.uniform(k_w[2 * l], (4 * hidden, d_in),
                               minval=-stdev, maxval=stdev, dtype=jnp.float32))
        w_hh_list.append(
            jax.random.uniform(k_w[2 * l + 1], (4 * hidden, hidden),
                               minval=-stdev, maxval=stdev, dtype=jnp.float32))

    fwd = jax.jit(stacked_lstm_forward)
    out, h_final, c_final = fwd(x, w_ih_list, w_hh_list)
    jax.block_until_ready((out, h_final, c_final))

    out_ref, h_ref, c_ref = ref_forward(x, w_ih_list, w_hh_list)
    # bf16 matmul operands -> relaxed tolerance vs. the f32 reference.
    assert jnp.allclose(out, out_ref, atol=2e-2, rtol=2e-2), \
        float(jnp.max(jnp.abs(out - out_ref)))
    assert jnp.allclose(h_final, h_ref, atol=2e-2, rtol=2e-2)
    assert jnp.allclose(c_final, c_ref, atol=2e-2, rtol=2e-2)

    print("KERNEL_OK")
</pallas_src>

<mosaic_0001>
module attributes {stable_mosaic.version = 11 : i64} {
  func.func @kernel(%arg0: i32, %arg1: i32, %arg2: memref<8x8x128xf32, #tpu.memory_space<vmem>>, %arg3: memref<128x512xbf16, #tpu.memory_space<vmem>>, %arg4: memref<128x512xbf16, #tpu.memory_space<vmem>>, %arg5: memref<8x8x128xf32, #tpu.memory_space<vmem>>, %arg6: memref<8x128xf32, #tpu.memory_space<vmem>>, %arg7: memref<8x128xf32, #tpu.memory_space<vmem>>, %arg8: memref<8x128xf32, #tpu.memory_space<vmem>>, %arg9: memref<8x128xf32, #tpu.memory_space<vmem>>) attributes {dimension_semantics = [#tpu.dimension_semantics<parallel>, #tpu.dimension_semantics<arbitrary>], iteration_bounds = array<i64: 1, 1>, scalar_prefetch = 0 : i64, scratch_operands = 2 : i64, tpu.core_type = #tpu.core_type<tc>, window_params = [{transform_indices = @transform_0, window_bounds = array<i64: 8, 8, 128>}, {pipeline_mode = #tpu.pipeline_mode<synchronous>, transform_indices = @transform_1, window_bounds = array<i64: 128, 512>}, {pipeline_mode = #tpu.pipeline_mode<synchronous>, transform_indices = @transform_2, window_bounds = array<i64: 128, 512>}, {transform_indices = @transform_3, window_bounds = array<i64: 8, 8, 128>}, {transform_indices = @transform_4, window_bounds = array<i64: 8, 128>}, {transform_indices = @transform_5, window_bounds = array<i64: 8, 128>}]} {
    %c0_i32 = arith.constant 0 : i32
    %0 = arith.cmpi eq, %arg1, %c0_i32 : i32
    %1 = arith.extui %0 : i1 to i32
    %c0_i32_0 = arith.constant 0 : i32
    %2 = arith.cmpi ne, %1, %c0_i32_0 : i32
    scf.if %2 {
      %cst_114 = arith.constant 0.000000e+00 : f32
      %320 = vector.broadcast %cst_114 : f32 to vector<8x128xf32>
      %c0_115 = arith.constant 0 : index
      %c0_116 = arith.constant 0 : index
      %321 = vector.load %arg8[%c0_115, %c0_116] : memref<8x128xf32, #tpu.memory_space<vmem>>, vector<8x128xf32>
      tpu.vector_store %arg8[%c0_115, %c0_116], %320 {strides = array<i32>} : memref<8x128xf32, #tpu.memory_space<vmem>>, vector<8x128xf32>,
      %cst_117 = arith.constant 0.000000e+00 : f32
      %322 = vector.broadcast %cst_117 : f32 to vector<8x128xf32>
      %c0_118 = arith.constant 0 : index
      %c0_119 = arith.constant 0 : index
      %323 = vector.load %arg9[%c0_118, %c0_119] : memref<8x128xf32, #tpu.memory_space<vmem>>, vector<8x128xf32>
      tpu.vector_store %arg9[%c0_118, %c0_119], %322 {strides = array<i32>} : memref<8x128xf32, #tpu.memory_space<vmem>>, vector<8x128xf32>,
    } else {
    }
    %c0 = arith.constant 0 : index
    %c0_1 = arith.constant 0 : index
    %c0_2 = arith.constant 0 : index
    %3 = vector.load %arg2[%c0, %c0_1, %c0_2] : memref<8x8x128xf32, #tpu.memory_space<vmem>>, vector<8x8x128xf32>
    %4 = vector.shape_cast %3 : vector<8x8x128xf32> to vector<64x128xf32>
    %5 = arith.truncf %4 : vector<64x128xf32> to vector<64x128xbf16>
    %c0_3 = arith.constant 0 : index
    %c0_4 = arith.constant 0 : index
    %6 = vector.load %arg3[%c0_3, %c0_4] : memref<128x512xbf16, #tpu.memory_space<vmem>>, vector<128x512xbf16>
    %cst = arith.constant dense<0.000000e+00> : vector<64x512xf32>
    %7 = tpu.matmul %5, %6, %cst {dimension_numbers = #tpu.dot_dimension_numbers<[1], [0], [0], [1], [0, 0, 1, 1], [], []>} : vector<64x128xbf16>, vector<128x512xbf16>, vector<64x512xf32> -> vector<64x512xf32>
    %c0_5 = arith.constant 0 : index
    %c0_6 = arith.constant 0 : index
    %8 = vector.load %arg4[%c0_5, %c0_6] : memref<128x512xbf16, #tpu.memory_space<vmem>>, vector<128x512xbf16>
    %c0_7 = arith.constant 0 : index
    %c0_8 = arith.constant 0 : index
    %9 = vector.load %arg8[%c0_7, %c0_8] : memref<8x128xf32, #tpu.memory_space<vmem>>, vector<8x128xf32>
    %c0_9 = arith.constant 0 : index
    %c0_10 = arith.constant 0 : index
    %10 = vector.load %arg9[%c0_9, %c0_10] : memref<8x128xf32, #tpu.memory_space<vmem>>, vector<8x128xf32>
    %11 = vector.extract_strided_slice %7 {offsets = [0, 0], sizes = [8, 512], strides = [1, 1]} : vector<64x512xf32> to vector<8x512xf32>
    %12 = arith.truncf %9 : vector<8x128xf32> to vector<8x128xbf16>
    %cst_11 = arith.constant dense<0.000000e+00> : vector<8x512xf32>
    %13 = tpu.matmul %12, %8, %cst_11 {dimension_numbers = #tpu.dot_dimension_numbers<[1], [0], [0], [1], [0, 0, 1, 1], [], []>} : vector<8x128xbf16>, vector<128x512xbf16>, vector<8x512xf32> -> vector<8x512xf32>
    %14 = arith.addf %11, %13 : vector<8x512xf32>
    %15 = vector.extract_strided_slice %14 {offsets = [0, 0], sizes = [8, 128], strides = [1, 1]} : vector<8x512xf32> to vector<8x128xf32>
    %cst_12 = arith.constant 5.000000e-01 : f32
    %16 = vector.broadcast %cst_12 : f32 to vector<8x128xf32>
    %17 = arith.mulf %16, %15 : vector<8x128xf32>
    %18 = math.tanh %17 : vector<8x128xf32>
    %cst_13 = arith.constant 5.000000e-01 : f32
    %19 = vector.broadcast %cst_13 : f32 to vector<8x128xf32>
    %20 = arith.mulf %19, %18 : vector<8x128xf32>
    %cst_14 = arith.constant 5.000000e-01 : f32
    %21 = vector.broadcast %cst_14 : f32 to vector<8x128xf32>
    %22 = arith.addf %20, %21 : vector<8x128xf32>
    %23 = vector.extract_strided_slice %14 {offsets = [0, 128], sizes = [8, 128], strides = [1, 1]} : vector<8x512xf32> to vector<8x128xf32>
    %cst_15 = arith.constant 5.000000e-01 : f32
    %24 = vector.broadcast %cst_15 : f32 to vector<8x128xf32>
    %25 = arith.mulf %24, %23 : vector<8x128xf32>
    %26 = math.tanh %25 : vector<8x128xf32>
    %cst_16 = arith.constant 5.000000e-01 : f32
    %27 = vector.broadcast %cst_16 : f32 to vector<8x128xf32>
    %28 = arith.mulf %27, %26 : vector<8x128xf32>
    %cst_17 = arith.constant 5.000000e-01 : f32
    %29 = vector.broadcast %cst_17 : f32 to vector<8x128xf32>
    %30 = arith.addf %28, %29 : vector<8x128xf32>
    %31 = vector.extract_strided_slice %14 {offsets = [0, 256], sizes = [8, 128], strides = [1, 1]} : vector<8x512xf32> to vector<8x128xf32>
    %32 = math.tanh %31 : vector<8x128xf32>
    %33 = vector.extract_strided_slice %14 {offsets = [0, 384], sizes = [8, 128], strides = [1, 1]} : vector<8x512xf32> to vector<8x128xf32>
    %cst_18 = arith.constant 5.000000e-01 : f32
    %34 = vector.broadcast %cst_18 : f32 to vector<8x128xf32>
    %35 = arith.mulf %34, %33 : vector<8x128xf32>
    %36 = math.tanh %35 : vector<8x128xf32>
    %cst_19 = arith.constant 5.000000e-01 : f32
    %37 = vector.broadcast %cst_19 : f32 to vector<8x128xf32>
    %38 = arith.mulf %37, %36 : vector<8x128xf32>
    %cst_20 = arith.constant 5.000000e-01 : f32
    %39 = vector.broadcast %cst_20 : f32 to vector<8x128xf32>
    %40 = arith.addf %38, %39 : vector<8x128xf32>
    %41 = arith.mulf %30, %10 : vector<8x128xf32>
    %42 = arith.mulf %22, %32 : vector<8x128xf32>
    %43 = arith.addf %41, %42 : vector<8x128xf32>
    %44 = math.tanh %43 : vector<8x128xf32>
    %45 = arith.mulf %40, %44 : vector<8x128xf32>
    %c0_21 = arith.constant 0 : index
    %c0_22 = arith.constant 0 : index
    %c0_23 = arith.constant 0 : index
    %46 = vector.load %arg5[%c0_21, %c0_22, %c0_23] : memref<8x8x128xf32, #tpu.memory_space<vmem>>, vector<1x8x128xf32>
    %47 = vector.shape_cast %46 : vector<1x8x128xf32> to vector<8x128xf32>
    %48 = vector.shape_cast %45 : vector<8x128xf32> to vector<1x8x128xf32>
    tpu.vector_store %arg5[%c0_21, %c0_22, %c0_23], %48 {strides = array<i32>} : memref<8x8x128xf32, #tpu.memory_space<vmem>>, vector<1x8x128xf32>,
    %49 = vector.extract_strided_slice %7 {offsets = [8, 0], sizes = [8, 512], strides = [1, 1]} : vector<64x512xf32> to vector<8x512xf32>
    %50 = arith.truncf %45 : vector<8x128xf32> to vector<8x128xbf16>
    %cst_24 = arith.constant dense<0.000000e+00> : vector<8x512xf32>
    %51 = tpu.matmul %50, %8, %cst_24 {dimension_numbers = #tpu.dot_dimension_numbers<[1], [0], [0], [1], [0, 0, 1, 1], [], []>} : vector<8x128xbf16>, vector<128x512xbf16>, vector<8x512xf32> -> vector<8x512xf32>
    %52 = arith.addf %49, %51 : vector<8x512xf32>
    %53 = vector.extract_strided_slice %52 {offsets = [0, 0], sizes = [8, 128], strides = [1, 1]} : vector<8x512xf32> to vector<8x128xf32>
    %cst_25 = arith.constant 5.000000e-01 : f32
    %54 = vector.broadcast %cst_25 : f32 to vector<8x128xf32>
    %55 = arith.mulf %54, %53 : vector<8x128xf32>
    %56 = math.tanh %55 : vector<8x128xf32>
    %cst_26 = arith.constant 5.000000e-01 : f32
    %57 = vector.broadcast %cst_26 : f32 to vector<8x128xf32>
    %58 = arith.mulf %57, %56 : vector<8x128xf32>
    %cst_27 = arith.constant 5.000000e-01 : f32
    %59 = vector.broadcast %cst_27 : f32 to vector<8x128xf32>
    %60 = arith.addf %58, %59 : vector<8x128xf32>
    %61 = vector.extract_strided_slice %52 {offsets = [0, 128], sizes = [8, 128], strides = [1, 1]} : vector<8x512xf32> to vector<8x128xf32>
    %cst_28 = arith.constant 5.000000e-01 : f32
    %62 = vector.broadcast %cst_28 : f32 to vector<8x128xf32>
    %63 = arith.mulf %62, %61 : vector<8x128xf32>
    %64 = math.tanh %63 : vector<8x128xf32>
    %cst_29 = arith.constant 5.000000e-01 : f32
    %65 = vector.broadcast %cst_29 : f32 to vector<8x128xf32>
    %66 = arith.mulf %65, %64 : vector<8x128xf32>
    %cst_30 = arith.constant 5.000000e-01 : f32
    %67 = vector.broadcast %cst_30 : f32 to vector<8x128xf32>
    %68 = arith.addf %66, %67 : vector<8x128xf32>
    %69 = vector.extract_strided_slice %52 {offsets = [0, 256], sizes = [8, 128], strides = [1, 1]} : vector<8x512xf32> to vector<8x128xf32>
    %70 = math.tanh %69 : vector<8x128xf32>
    %71 = vector.extract_strided_slice %52 {offsets = [0, 384], sizes = [8, 128], strides = [1, 1]} : vector<8x512xf32> to vector<8x128xf32>
    %cst_31 = arith.constant 5.000000e-01 : f32
    %72 = vector.broadcast %cst_31 : f32 to vector<8x128xf32>
    %73 = arith.mulf %72, %71 : vector<8x128xf32>
    %74 = math.tanh %73 : vector<8x128xf32>
    %cst_32 = arith.constant 5.000000e-01 : f32
    %75 = vector.broadcast %cst_32 : f32 to vector<8x128xf32>
    %76 = arith.mulf %75, %74 : vector<8x128xf32>
    %cst_33 = arith.constant 5.000000e-01 : f32
    %77 = vector.broadcast %cst_33 : f32 to vector<8x128xf32>
    %78 = arith.addf %76, %77 : vector<8x128xf32>
    %79 = arith.mulf %68, %43 : vector<8x128xf32>
    %80 = arith.mulf %60, %70 : vector<8x128xf32>
    %81 = arith.addf %79, %80 : vector<8x128xf32>
    %82 = math.tanh %81 : vector<8x128xf32>
    %83 = arith.mulf %78, %82 : vector<8x128xf32>
    %c1 = arith.constant 1 : index
    %c0_34 = arith.constant 0 : index
    %c0_35 = arith.constant 0 : index
    %84 = vector.load %arg5[%c1, %c0_34, %c0_35] : memref<8x8x128xf32, #tpu.memory_space<vmem>>, vector<1x8x128xf32>
    %85 = vector.shape_cast %84 : vector<1x8x128xf32> to vector<8x128xf32>
    %86 = vector.shape_cast %83 : vector<8x128xf32> to vector<1x8x128xf32>
    tpu.vector_store %arg5[%c1, %c0_34, %c0_35], %86 {strides = array<i32>} : memref<8x8x128xf32, #tpu.memory_space<vmem>>, vector<1x8x128xf32>,
    %87 = vector.extract_strided_slice %7 {offsets = [16, 0], sizes = [8, 512], strides = [1, 1]} : vector<64x512xf32> to vector<8x512xf32>
    %88 = arith.truncf %83 : vector<8x128xf32> to vector<8x128xbf16>
    %cst_36 = arith.constant dense<0.000000e+00> : vector<8x512xf32>
    %89 = tpu.matmul %88, %8, %cst_36 {dimension_numbers = #tpu.dot_dimension_numbers<[1], [0], [0], [1], [0, 0, 1, 1], [], []>} : vector<8x128xbf16>, vector<128x512xbf16>, vector<8x512xf32> -> vector<8x512xf32>
    %90 = arith.addf %87, %89 : vector<8x512xf32>
    %91 = vector.extract_strided_slice %90 {offsets = [0, 0], sizes = [8, 128], strides = [1, 1]} : vector<8x512xf32> to vector<8x128xf32>
    %cst_37 = arith.constant 5.000000e-01 : f32
    %92 = vector.broadcast %cst_37 : f32 to vector<8x128xf32>
    %93 = arith.mulf %92, %91 : vector<8x128xf32>
    %94 = math.tanh %93 : vector<8x128xf32>
    %cst_38 = arith.constant 5.000000e-01 : f32
    %95 = vector.broadcast %cst_38 : f32 to vector<8x128xf32>
    %96 = arith.mulf %95, %94 : vector<8x128xf32>
    %cst_39 = arith.constant 5.000000e-01 : f32
    %97 = vector.broadcast %cst_39 : f32 to vector<8x128xf32>
    %98 = arith.addf %96, %97 : vector<8x128xf32>
    %99 = vector.extract_strided_slice %90 {offsets = [0, 128], sizes = [8, 128], strides = [1, 1]} : vector<8x512xf32> to vector<8x128xf32>
    %cst_40 = arith.constant 5.000000e-01 : f32
    %100 = vector.broadcast %cst_40 : f32 to vector<8x128xf32>
    %101 = arith.mulf %100, %99 : vector<8x128xf32>
    %102 = math.tanh %101 : vector<8x128xf32>
    %cst_41 = arith.constant 5.000000e-01 : f32
    %103 = vector.broadcast %cst_41 : f32 to vector<8x128xf32>
    %104 = arith.mulf %103, %102 : vector<8x128xf32>
    %cst_42 = arith.constant 5.000000e-01 : f32
    %105 = vector.broadcast %cst_42 : f32 to vector<8x128xf32>
    %106 = arith.addf %104, %105 : vector<8x128xf32>
    %107 = vector.extract_strided_slice %90 {offsets = [0, 256], sizes = [8, 128], strides = [1, 1]} : vector<8x512xf32> to vector<8x128xf32>
    %108 = math.tanh %107 : vector<8x128xf32>
    %109 = vector.extract_strided_slice %90 {offsets = [0, 384], sizes = [8, 128], strides = [1, 1]} : vector<8x512xf32> to vector<8x128xf32>
    %cst_43 = arith.constant 5.000000e-01 : f32
    %110 = vector.broadcast %cst_43 : f32 to vector<8x128xf32>
    %111 = arith.mulf %110, %109 : vector<8x128xf32>
    %112 = math.tanh %111 : vector<8x128xf32>
    %cst_44 = arith.constant 5.000000e-01 : f32
    %113 = vector.broadcast %cst_44 : f32 to vector<8x128xf32>
    %114 = arith.mulf %113, %112 : vector<8x128xf32>
    %cst_45 = arith.constant 5.000000e-01 : f32
    %115 = vector.broadcast %cst_45 : f32 to vector<8x128xf32>
    %116 = arith.addf %114, %115 : vector<8x128xf32>
    %117 = arith.mulf %106, %81 : vector<8x128xf32>
    %118 = arith.mulf %98, %108 : vector<8x128xf32>
    %119 = arith.addf %117, %118 : vector<8x128xf32>
    %120 = math.tanh %119 : vector<8x128xf32>
    %121 = arith.mulf %116, %120 : vector<8x128xf32>
    %c2 = arith.constant 2 : index
    %c0_46 = arith.constant 0 : index
    %c0_47 = arith.constant 0 : index
    %122 = vector.load %arg5[%c2, %c0_46, %c0_47] : memref<8x8x128xf32, #tpu.memory_space<vmem>>, vector<1x8x128xf32>
    %123 = vector.shape_cast %122 : vector<1x8x128xf32> to vector<8x128xf32>
    %124 = vector.shape_cast %121 : vector<8x128xf32> to vector<1x8x128xf32>
    tpu.vector_store %arg5[%c2, %c0_46, %c0_47], %124 {strides = array<i32>} : memref<8x8x128xf32, #tpu.memory_space<vmem>>, vector<1x8x128xf32>,
    %125 = vector.extract_strided_slice %7 {offsets = [24, 0], sizes = [8, 512], strides = [1, 1]} : vector<64x512xf32> to vector<8x512xf32>
    %126 = arith.truncf %121 : vector<8x128xf32> to vector<8x128xbf16>
    %cst_48 = arith.constant dense<0.000000e+00> : vector<8x512xf32>
    %127 = tpu.matmul %126, %8, %cst_48 {dimension_numbers = #tpu.dot_dimension_numbers<[1], [0], [0], [1], [0, 0, 1, 1], [], []>} : vector<8x128xbf16>, vector<128x512xbf16>, vector<8x512xf32> -> vector<8x512xf32>
    %128 = arith.addf %125, %127 : vector<8x512xf32>
    %129 = vector.extract_strided_slice %128 {offsets = [0, 0], sizes = [8, 128], strides = [1, 1]} : vector<8x512xf32> to vector<8x128xf32>
    %cst_49 = arith.constant 5.000000e-01 : f32
    %130 = vector.broadcast %cst_49 : f32 to vector<8x128xf32>
    %131 = arith.mulf %130, %129 : vector<8x128xf32>
    %132 = math.tanh %131 : vector<8x128xf32>
    %cst_50 = arith.constant 5.000000e-01 : f32
    %133 = vector.broadcast %cst_50 : f32 to vector<8x128xf32>
    %134 = arith.mulf %133, %132 : vector<8x128xf32>
    %cst_51 = arith.constant 5.000000e-01 : f32
    %135 = vector.broadcast %cst_51 : f32 to vector<8x128xf32>
    %136 = arith.addf %134, %135 : vector<8x128xf32>
    %137 = vector.extract_strided_slice %128 {offsets = [0, 128], sizes = [8, 128], strides = [1, 1]} : vector<8x512xf32> to vector<8x128xf32>
    %cst_52 = arith.constant 5.000000e-01 : f32
    %138 = vector.broadcast %cst_52 : f32 to vector<8x128xf32>
    %139 = arith.mulf %138, %137 : vector<8x128xf32>
    %140 = math.tanh %139 : vector<8x128xf32>
    %cst_53 = arith.constant 5.000000e-01 : f32
    %141 = vector.broadcast %cst_53 : f32 to vector<8x128xf32>
    %142 = arith.mulf %141, %140 : vector<8x128xf32>
    %cst_54 = arith.constant 5.000000e-01 : f32
    %143 = vector.broadcast %cst_54 : f32 to vector<8x128xf32>
    %144 = arith.addf %142, %143 : vector<8x128xf32>
    %145 = vector.extract_strided_slice %128 {offsets = [0, 256], sizes = [8, 128], strides = [1, 1]} : vector<8x512xf32> to vector<8x128xf32>
    %146 = math.tanh %145 : vector<8x128xf32>
    %147 = vector.extract_strided_slice %128 {offsets = [0, 384], sizes = [8, 128], strides = [1, 1]} : vector<8x512xf32> to vector<8x128xf32>
    %cst_55 = arith.constant 5.000000e-01 : f32
    %148 = vector.broadcast %cst_55 : f32 to vector<8x128xf32>
    %149 = arith.mulf %148, %147 : vector<8x128xf32>
    %150 = math.tanh %149 : vector<8x128xf32>
    %cst_56 = arith.constant 5.000000e-01 : f32
    %151 = vector.broadcast %cst_56 : f32 to vector<8x128xf32>
    %152 = arith.mulf %151, %150 : vector<8x128xf32>
    %cst_57 = arith.constant 5.000000e-01 : f32
    %153 = vector.broadcast %cst_57 : f32 to vector<8x128xf32>
    %154 = arith.addf %152, %153 : vector<8x128xf32>
    %155 = arith.mulf %144, %119 : vector<8x128xf32>
    %156 = arith.mulf %136, %146 : vector<8x128xf32>
    %157 = arith.addf %155, %156 : vector<8x128xf32>
    %158 = math.tanh %157 : vector<8x128xf32>
    %159 = arith.mulf %154, %158 : vector<8x128xf32>
    %c3 = arith.constant 3 : index
    %c0_58 = arith.constant 0 : index
    %c0_59 = arith.constant 0 : index
    %160 = vector.load %arg5[%c3, %c0_58, %c0_59] : memref<8x8x128xf32, #tpu.memory_space<vmem>>, vector<1x8x128xf32>
    %161 = vector.shape_cast %160 : vector<1x8x128xf32> to vector<8x128xf32>
    %162 = vector.shape_cast %159 : vector<8x128xf32> to vector<1x8x128xf32>
    tpu.vector_store %arg5[%c3, %c0_58, %c0_59], %162 {strides = array<i32>} : memref<8x8x128xf32, #tpu.memory_space<vmem>>, vector<1x8x128xf32>,
    %163 = vector.extract_strided_slice %7 {offsets = [32, 0], sizes = [8, 512], strides = [1, 1]} : vector<64x512xf32> to vector<8x512xf32>
    %164 = arith.truncf %159 : vector<8x128xf32> to vector<8x128xbf16>
    %cst_60 = arith.constant dense<0.000000e+00> : vector<8x512xf32>
    %165 = tpu.matmul %164, %8, %cst_60 {dimension_numbers = #tpu.dot_dimension_numbers<[1], [0], [0], [1], [0, 0, 1, 1], [], []>} : vector<8x128xbf16>, vector<128x512xbf16>, vector<8x512xf32> -> vector<8x512xf32>
    %166 = arith.addf %163, %165 : vector<8x512xf32>
    %167 = vector.extract_strided_slice %166 {offsets = [0, 0], sizes = [8, 128], strides = [1, 1]} : vector<8x512xf32> to vector<8x128xf32>
    %cst_61 = arith.constant 5.000000e-01 : f32
    %168 = vector.broadcast %cst_61 : f32 to vector<8x128xf32>
    %169 = arith.mulf %168, %167 : vector<8x128xf32>
    %170 = math.tanh %169 : vector<8x128xf32>
    %cst_62 = arith.constant 5.000000e-01 : f32
    %171 = vector.broadcast %cst_62 : f32 to vector<8x128xf32>
    %172 = arith.mulf %171, %170 : vector<8x128xf32>
    %cst_63 = arith.constant 5.000000e-01 : f32
    %173 = vector.broadcast %cst_63 : f32 to vector<8x128xf32>
    %174 = arith.addf %172, %173 : vector<8x128xf32>
    %175 = vector.extract_strided_slice %166 {offsets = [0, 128], sizes = [8, 128], strides = [1, 1]} : vector<8x512xf32> to vector<8x128xf32>
    %cst_64 = arith.constant 5.000000e-01 : f32
    %176 = vector.broadcast %cst_64 : f32 to vector<8x128xf32>
    %177 = arith.mulf %176, %175 : vector<8x128xf32>
    %178 = math.tanh %177 : vector<8x128xf32>
    %cst_65 = arith.constant 5.000000e-01 : f32
    %179 = vector.broadcast %cst_65 : f32 to vector<8x128xf32>
    %180 = arith.mulf %179, %178 : vector<8x128xf32>
    %cst_66 = arith.constant 5.000000e-01 : f32
    %181 = vector.broadcast %cst_66 : f32 to vector<8x128xf32>
    %182 = arith.addf %180, %181 : vector<8x128xf32>
    %183 = vector.extract_strided_slice %166 {offsets = [0, 256], sizes = [8, 128], strides = [1, 1]} : vector<8x512xf32> to vector<8x128xf32>
    %184 = math.tanh %183 : vector<8x128xf32>
    %185 = vector.extract_strided_slice %166 {offsets = [0, 384], sizes = [8, 128], strides = [1, 1]} : vector<8x512xf32> to vector<8x128xf32>
    %cst_67 = arith.constant 5.000000e-01 : f32
    %186 = vector.broadcast %cst_67 : f32 to vector<8x128xf32>
    %187 = arith.mulf %186, %185 : vector<8x128xf32>
    %188 = math.tanh %187 : vector<8x128xf32>
    %cst_68 = arith.constant 5.000000e-01 : f32
    %189 = vector.broadcast %cst_68 : f32 to vector<8x128xf32>
    %190 = arith.mulf %189, %188 : vector<8x128xf32>
    %cst_69 = arith.constant 5.000000e-01 : f32
    %191 = vector.broadcast %cst_69 : f32 to vector<8x128xf32>
    %192 = arith.addf %190, %191 : vector<8x128xf32>
    %193 = arith.mulf %182, %157 : vector<8x128xf32>
    %194 = arith.mulf %174, %184 : vector<8x128xf32>
    %195 = arith.addf %193, %194 : vector<8x128xf32>
    %196 = math.tanh %195 : vector<8x128xf32>
    %197 = arith.mulf %192, %196 : vector<8x128xf32>
    %c4 = arith.constant 4 : index
    %c0_70 = arith.constant 0 : index
    %c0_71 = arith.constant 0 : index
    %198 = vector.load %arg5[%c4, %c0_70, %c0_71] : memref<8x8x128xf32, #tpu.memory_space<vmem>>, vector<1x8x128xf32>
    %199 = vector.shape_cast %198 : vector<1x8x128xf32> to vector<8x128xf32>
    %200 = vector.shape_cast %197 : vector<8x128xf32> to vector<1x8x128xf32>
    tpu.vector_store %arg5[%c4, %c0_70, %c0_71], %200 {strides = array<i32>} : memref<8x8x128xf32, #tpu.memory_space<vmem>>, vector<1x8x128xf32>,
    %201 = vector.extract_strided_slice %7 {offsets = [40, 0], sizes = [8, 512], strides = [1, 1]} : vector<64x512xf32> to vector<8x512xf32>
    %202 = arith.truncf %197 : vector<8x128xf32> to vector<8x128xbf16>
    %cst_72 = arith.constant dense<0.000000e+00> : vector<8x512xf32>
    %203 = tpu.matmul %202, %8, %cst_72 {dimension_numbers = #tpu.dot_dimension_numbers<[1], [0], [0], [1], [0, 0, 1, 1], [], []>} : vector<8x128xbf16>, vector<128x512xbf16>, vector<8x512xf32> -> vector<8x512xf32>
    %204 = arith.addf %201, %203 : vector<8x512xf32>
    %205 = vector.extract_strided_slice %204 {offsets = [0, 0], sizes = [8, 128], strides = [1, 1]} : vector<8x512xf32> to vector<8x128xf32>
    %cst_73 = arith.constant 5.000000e-01 : f32
    %206 = vector.broadcast %cst_73 : f32 to vector<8x128xf32>
    %207 = arith.mulf %206, %205 : vector<8x128xf32>
    %208 = math.tanh %207 : vector<8x128xf32>
    %cst_74 = arith.constant 5.000000e-01 : f32
    %209 = vector.broadcast %cst_74 : f32 to vector<8x128xf32>
    %210 = arith.mulf %209, %208 : vector<8x128xf32>
    %cst_75 = arith.constant 5.000000e-01 : f32
    %211 = vector.broadcast %cst_75 : f32 to vector<8x128xf32>
    %212 = arith.addf %210, %211 : vector<8x128xf32>
    %213 = vector.extract_strided_slice %204 {offsets = [0, 128], sizes = [8, 128], strides = [1, 1]} : vector<8x512xf32> to vector<8x128xf32>
    %cst_76 = arith.constant 5.000000e-01 : f32
    %214 = vector.broadcast %cst_76 : f32 to vector<8x128xf32>
    %215 = arith.mulf %214, %213 : vector<8x128xf32>
    %216 = math.tanh %215 : vector<8x128xf32>
    %cst_77 = arith.constant 5.000000e-01 : f32
    %217 = vector.broadcast %cst_77 : f32 to vector<8x128xf32>
    %218 = arith.mulf %217, %216 : vector<8x128xf32>
    %cst_78 = arith.constant 5.000000e-01 : f32
    %219 = vector.broadcast %cst_78 : f32 to vector<8x128xf32>
    %220 = arith.addf %218, %219 : vector<8x128xf32>
    %221 = vector.extract_strided_slice %204 {offsets = [0, 256], sizes = [8, 128], strides = [1, 1]} : vector<8x512xf32> to vector<8x128xf32>
    %222 = math.tanh %221 : vector<8x128xf32>
    %223 = vector.extract_strided_slice %204 {offsets = [0, 384], sizes = [8, 128], strides = [1, 1]} : vector<8x512xf32> to vector<8x128xf32>
    %cst_79 = arith.constant 5.000000e-01 : f32
    %224 = vector.broadcast %cst_79 : f32 to vector<8x128xf32>
    %225 = arith.mulf %224, %223 : vector<8x128xf32>
    %226 = math.tanh %225 : vector<8x128xf32>
    %cst_80 = arith.constant 5.000000e-01 : f32
    %227 = vector.broadcast %cst_80 : f32 to vector<8x128xf32>
    %228 = arith.mulf %227, %226 : vector<8x128xf32>
    %cst_81 = arith.constant 5.000000e-01 : f32
    %229 = vector.broadcast %cst_81 : f32 to vector<8x128xf32>
    %230 = arith.addf %228, %229 : vector<8x128xf32>
    %231 = arith.mulf %220, %195 : vector<8x128xf32>
    %232 = arith.mulf %212, %222 : vector<8x128xf32>
    %233 = arith.addf %231, %232 : vector<8x128xf32>
    %234 = math.tanh %233 : vector<8x128xf32>
    %235 = arith.mulf %230, %234 : vector<8x128xf32>
    %c5 = arith.constant 5 : index
    %c0_82 = arith.constant 0 : index
    %c0_83 = arith.constant 0 : index
    %236 = vector.load %arg5[%c5, %c0_82, %c0_83] : memref<8x8x128xf32, #tpu.memory_space<vmem>>, vector<1x8x128xf32>
    %237 = vector.shape_cast %236 : vector<1x8x128xf32> to vector<8x128xf32>
    %238 = vector.shape_cast %235 : vector<8x128xf32> to vector<1x8x128xf32>
    tpu.vector_store %arg5[%c5, %c0_82, %c0_83], %238 {strides = array<i32>} : memref<8x8x128xf32, #tpu.memory_space<vmem>>, vector<1x8x128xf32>,
    %239 = vector.extract_strided_slice %7 {offsets = [48, 0], sizes = [8, 512], strides = [1, 1]} : vector<64x512xf32> to vector<8x512xf32>
    %240 = arith.truncf %235 : vector<8x128xf32> to vector<8x128xbf16>
    %cst_84 = arith.constant dense<0.000000e+00> : vector<8x512xf32>
    %241 = tpu.matmul %240, %8, %cst_84 {dimension_numbers = #tpu.dot_dimension_numbers<[1], [0], [0], [1], [0, 0, 1, 1], [], []>} : vector<8x128xbf16>, vector<128x512xbf16>, vector<8x512xf32> -> vector<8x512xf32>
    %242 = arith.addf %239, %241 : vector<8x512xf32>
    %243 = vector.extract_strided_slice %242 {offsets = [0, 0], sizes = [8, 128], strides = [1, 1]} : vector<8x512xf32> to vector<8x128xf32>
    %cst_85 = arith.constant 5.000000e-01 : f32
    %244 = vector.broadcast %cst_85 : f32 to vector<8x128xf32>
    %245 = arith.mulf %244, %243 : vector<8x128xf32>
    %246 = math.tanh %245 : vector<8x128xf32>
    %cst_86 = arith.constant 5.000000e-01 : f32
    %247 = vector.broadcast %cst_86 : f32 to vector<8x128xf32>
    %248 = arith.mulf %247, %246 : vector<8x128xf32>
    %cst_87 = arith.constant 5.000000e-01 : f32
    %249 = vector.broadcast %cst_87 : f32 to vector<8x128xf32>
    %250 = arith.addf %248, %249 : vector<8x128xf32>
    %251 = vector.extract_strided_slice %242 {offsets = [0, 128], sizes = [8, 128], strides = [1, 1]} : vector<8x512xf32> to vector<8x128xf32>
    %cst_88 = arith.constant 5.000000e-01 : f32
    %252 = vector.broadcast %cst_88 : f32 to vector<8x128xf32>
    %253 = arith.mulf %252, %251 : vector<8x128xf32>
    %254 = math.tanh %253 : vector<8x128xf32>
    %cst_89 = arith.constant 5.000000e-01 : f32
    %255 = vector.broadcast %cst_89 : f32 to vector<8x128xf32>
    %256 = arith.mulf %255, %254 : vector<8x128xf32>
    %cst_90 = arith.constant 5.000000e-01 : f32
    %257 = vector.broadcast %cst_90 : f32 to vector<8x128xf32>
    %258 = arith.addf %256, %257 : vector<8x128xf32>
    %259 = vector.extract_strided_slice %242 {offsets = [0, 256], sizes = [8, 128], strides = [1, 1]} : vector<8x512xf32> to vector<8x128xf32>
    %260 = math.tanh %259 : vector<8x128xf32>
    %261 = vector.extract_strided_slice %242 {offsets = [0, 384], sizes = [8, 128], strides = [1, 1]} : vector<8x512xf32> to vector<8x128xf32>
    %cst_91 = arith.constant 5.000000e-01 : f32
    %262 = vector.broadcast %cst_91 : f32 to vector<8x128xf32>
    %263 = arith.mulf %262, %261 : vector<8x128xf32>
    %264 = math.tanh %263 : vector<8x128xf32>
    %cst_92 = arith.constant 5.000000e-01 : f32
    %265 = vector.broadcast %cst_92 : f32 to vector<8x128xf32>
    %266 = arith.mulf %265, %264 : vector<8x128xf32>
    %cst_93 = arith.constant 5.000000e-01 : f32
    %267 = vector.broadcast %cst_93 : f32 to vector<8x128xf32>
    %268 = arith.addf %266, %267 : vector<8x128xf32>
    %269 = arith.mulf %258, %233 : vector<8x128xf32>
    %270 = arith.mulf %250, %260 : vector<8x128xf32>
    %271 = arith.addf %269, %270 : vector<8x128xf32>
    %272 = math.tanh %271 : vector<8x128xf32>
    %273 = arith.mulf %268, %272 : vector<8x128xf32>
    %c6 = arith.constant 6 : index
    %c0_94 = arith.constant 0 : index
    %c0_95 = arith.constant 0 : index
    %274 = vector.load %arg5[%c6, %c0_94, %c0_95] : memref<8x8x128xf32, #tpu.memory_space<vmem>>, vector<1x8x128xf32>
    %275 = vector.shape_cast %274 : vector<1x8x128xf32> to vector<8x128xf32>
    %276 = vector.shape_cast %273 : vector<8x128xf32> to vector<1x8x128xf32>
    tpu.vector_store %arg5[%c6, %c0_94, %c0_95], %276 {strides = array<i32>} : memref<8x8x128xf32, #tpu.memory_space<vmem>>, vector<1x8x128xf32>,
    %277 = vector.extract_strided_slice %7 {offsets = [56, 0], sizes = [8, 512], strides = [1, 1]} : vector<64x512xf32> to vector<8x512xf32>
    %278 = arith.truncf %273 : vector<8x128xf32> to vector<8x128xbf16>
    %cst_96 = arith.constant dense<0.000000e+00> : vector<8x512xf32>
    %279 = tpu.matmul %278, %8, %cst_96 {dimension_numbers = #tpu.dot_dimension_numbers<[1], [0], [0], [1], [0, 0, 1, 1], [], []>} : vector<8x128xbf16>, vector<128x512xbf16>, vector<8x512xf32> -> vector<8x512xf32>
    %280 = arith.addf %277, %279 : vector<8x512xf32>
    %281 = vector.extract_strided_slice %280 {offsets = [0, 0], sizes = [8, 128], strides = [1, 1]} : vector<8x512xf32> to vector<8x128xf32>
    %cst_97 = arith.constant 5.000000e-01 : f32
    %282 = vector.broadcast %cst_97 : f32 to vector<8x128xf32>
    %283 = arith.mulf %282, %281 : vector<8x128xf32>
    %284 = math.tanh %283 : vector<8x128xf32>
    %cst_98 = arith.constant 5.000000e-01 : f32
    %285 = vector.broadcast %cst_98 : f32 to vector<8x128xf32>
    %286 = arith.mulf %285, %284 : vector<8x128xf32>
    %cst_99 = arith.constant 5.000000e-01 : f32
    %287 = vector.broadcast %cst_99 : f32 to vector<8x128xf32>
    %288 = arith.addf %286, %287 : vector<8x128xf32>
    %289 = vector.extract_strided_slice %280 {offsets = [0, 128], sizes = [8, 128], strides = [1, 1]} : vector<8x512xf32> to vector<8x128xf32>
    %cst_100 = arith.constant 5.000000e-01 : f32
    %290 = vector.broadcast %cst_100 : f32 to vector<8x128xf32>
    %291 = arith.mulf %290, %289 : vector<8x128xf32>
    %292 = math.tanh %291 : vector<8x128xf32>
    %cst_101 = arith.constant 5.000000e-01 : f32
    %293 = vector.broadcast %cst_101 : f32 to vector<8x128xf32>
    %294 = arith.mulf %293, %292 : vector<8x128xf32>
    %cst_102 = arith.constant 5.000000e-01 : f32
    %295 = vector.broadcast %cst_102 : f32 to vector<8x128xf32>
    %296 = arith.addf %294, %295 : vector<8x128xf32>
    %297 = vector.extract_strided_slice %280 {offsets = [0, 256], sizes = [8, 128], strides = [1, 1]} : vector<8x512xf32> to vector<8x128xf32>
    %298 = math.tanh %297 : vector<8x128xf32>
    %299 = vector.extract_strided_slice %280 {offsets = [0, 384], sizes = [8, 128], strides = [1, 1]} : vector<8x512xf32> to vector<8x128xf32>
    %cst_103 = arith.constant 5.000000e-01 : f32
    %300 = vector.broadcast %cst_103 : f32 to vector<8x128xf32>
    %301 = arith.mulf %300, %299 : vector<8x128xf32>
    %302 = math.tanh %301 : vector<8x128xf32>
    %cst_104 = arith.constant 5.000000e-01 : f32
    %303 = vector.broadcast %cst_104 : f32 to vector<8x128xf32>
    %304 = arith.mulf %303, %302 : vector<8x128xf32>
    %cst_105 = arith.constant 5.000000e-01 : f32
    %305 = vector.broadcast %cst_105 : f32 to vector<8x128xf32>
    %306 = arith.addf %304, %305 : vector<8x128xf32>
    %307 = arith.mulf %296, %271 : vector<8x128xf32>
    %308 = arith.mulf %288, %298 : vector<8x128xf32>
    %309 = arith.addf %307, %308 : vector<8x128xf32>
    %310 = math.tanh %309 : vector<8x128xf32>
    %311 = arith.mulf %306, %310 : vector<8x128xf32>
    %c7 = arith.constant 7 : index
    %c0_106 = arith.constant 0 : index
    %c0_107 = arith.constant 0 : index
    %312 = vector.load %arg5[%c7, %c0_106, %c0_107] : memref<8x8x128xf32, #tpu.memory_space<vmem>>, vector<1x8x128xf32>
    %313 = vector.shape_cast %312 : vector<1x8x128xf32> to vector<8x128xf32>
    %314 = vector.shape_cast %311 : vector<8x128xf32> to vector<1x8x128xf32>
    tpu.vector_store %arg5[%c7, %c0_106, %c0_107], %314 {strides = array<i32>} : memref<8x8x128xf32, #tpu.memory_space<vmem>>, vector<1x8x128xf32>,
    %c0_108 = arith.constant 0 : index
    %c0_109 = arith.constant 0 : index
    %315 = vector.load %arg8[%c0_108, %c0_109] : memref<8x128xf32, #tpu.memory_space<vmem>>, vector<8x128xf32>
    tpu.vector_store %arg8[%c0_108, %c0_109], %311 {strides = array<i32>} : memref<8x128xf32, #tpu.memory_space<vmem>>, vector<8x128xf32>,
    %c0_110 = arith.constant 0 : index
    %c0_111 = arith.constant 0 : index
    %316 = vector.load %arg9[%c0_110, %c0_111] : memref<8x128xf32, #tpu.memory_space<vmem>>, vector<8x128xf32>
    tpu.vector_store %arg9[%c0_110, %c0_111], %309 {strides = array<i32>} : memref<8x128xf32, #tpu.memory_space<vmem>>, vector<8x128xf32>,
    %c0_i32_112 = arith.constant 0 : i32
    %317 = arith.cmpi eq, %arg1, %c0_i32_112 : i32
    %318 = arith.extui %317 : i1 to i32
    %c0_i32_113 = arith.constant 0 : i32
    %319 = arith.cmpi ne, %318, %c0_i32_113 : i32
    scf.if %319 {
      %c0_114 = arith.constant 0 : index
      %c0_115 = arith.constant 0 : index
      %320 = vector.load %arg6[%c0_114, %c0_115] : memref<8x128xf32, #tpu.memory_space<vmem>>, vector<8x128xf32>
      tpu.vector_store %arg6[%c0_114, %c0_115], %311 {strides = array<i32>} : memref<8x128xf32, #tpu.memory_space<vmem>>, vector<8x128xf32>,
      %c0_116 = arith.constant 0 : index
      %c0_117 = arith.constant 0 : index
      %321 = vector.load %arg7[%c0_116, %c0_117] : memref<8x128xf32, #tpu.memory_space<vmem>>, vector<8x128xf32>
      tpu.vector_store %arg7[%c0_116, %c0_117], %309 {strides = array<i32>} : memref<8x128xf32, #tpu.memory_space<vmem>>, vector<8x128xf32>,
    } else {
    }
    return
  }
  func.func @transform_0(%arg0: i32, %arg1: i32) -> (i32, i32, i32) {
    %c0_i32 = arith.constant 0 : i32
    %c0_i32_0 = arith.constant 0 : i32
    return %arg1, %arg0, %c0_i32 : i32, i32, i32
  }
  func.func @transform_1(%arg0: i32, %arg1: i32) -> (i32, i32) {
    %c0_i32 = arith.constant 0 : i32
    %c0_i32_0 = arith.constant 0 : i32
    %c0_i32_1 = arith.constant 0 : i32
    return %c0_i32, %c0_i32_0 : i32, i32
  }
  func.func @transform_2(%arg0: i32, %arg1: i32) -> (i32, i32) {
    %c0_i32 = arith.constant 0 : i32
    %c0_i32_0 = arith.constant 0 : i32
    %c0_i32_1 = arith.constant 0 : i32
    return %c0_i32, %c0_i32_0 : i32, i32
  }
  func.func @transform_3(%arg0: i32, %arg1: i32) -> (i32, i32, i32) {
    %c0_i32 = arith.constant 0 : i32
    %c0_i32_0 = arith.constant 0 : i32
    return %arg1, %arg0, %c0_i32 : i32, i32, i32
  }
  func.func @transform_4(%arg0: i32, %arg1: i32) -> (i32, i32) {
    %c0_i32 = arith.constant 0 : i32
    %c0_i32_0 = arith.constant 0 : i32
    return %arg0, %c0_i32 : i32, i32
  }
  func.func @transform_5(%arg0: i32, %arg1: i32) -> (i32, i32) {
    %c0_i32 = arith.constant 0 : i32
    %c0_i32_0 = arith.constant 0 : i32
    return %arg0, %c0_i32 : i32, i32
  }
}

</mosaic_0001>

<bundles_post_ra>
// kernel: stacked_lstm_forward.2
= control target key start
LH: loop header
LB: loop body
LE: loop exit
PB: predicated region body
PF: predicated region fallthrough
CT: control target
= control target key end

     0   :  { %v2523_v1 = vmov 0   ;;  %s2517_s1 = inlined_call_operand.vmem [shape: bf16[128,512], index: 1, kind: input, shape index: {}]   ;;  %s2518_s2 = inlined_call_operand.vmem [shape: bf16[128,512], index: 2, kind: input, shape index: {}]   ;;  %s2519_s0 = inlined_call_operand.vmem [shape: f32[8,8,128], index: 0, kind: input, shape index: {}]   ;;  %s2520_s3 = inlined_call_operand.vmem [shape: f32[8,8,128], index: 3, kind: output, shape index: {0}]   ;;  %s2521_s5 = inlined_call_operand.vmem [shape: f32[8,128], index: 5, kind: output, shape index: {2}]   ;;  %s2522_s4 = inlined_call_operand.vmem [shape: f32[8,128], index: 4, kind: output, shape index: {1}]  }
   0x1   :  { %v1515_v0 = vld [vmem:[%s2517_s1 + $0x4] ss:$16 sps:$4 sm:$0xff]   ;;  %260 = vmatprep.mubr.bf16.mxu0 %v2523_v1  ;;  %333 = vmatprep.mubr.bf16.mxu1 %v2523_v1  ;;  %v1517_v2 = vld [vmem:[%s2517_s1 + $0xc] ss:$16 sps:$4 sm:$0xff]   ;;  %v1519_v3 = vld [vmem:[%s2517_s1] ss:$16 sps:$4 sm:$0xff]  }
   0x2   :  { %228 = vmatprep.subr.bf16.mxu0 %v1515_v0  ;;  %v1520_v4 = vld [vmem:[%s2517_s1 + $0x8] ss:$16 sps:$4 sm:$0xff]   ;;  %301 = vmatprep.subr.bf16.mxu1 %v1517_v2  ;;  %v1521_v5 = vld [vmem:[%s2517_s1 + $0x24] ss:$16 sps:$4 sm:$0xff]   ;;  %v1523_v6 = vld [vmem:[%s2517_s1 + $0x2c] ss:$16 sps:$4 sm:$0xff]  }
   0x3   :  { %229 = vmatpush1.bf16.msra.mxu0 %v1519_v3  ;;  %302 = vmatpush1.bf16.msra.mxu1 %v1520_v4  ;;  %v1525_v7 = vld [vmem:[%s2517_s1 + $0x20] ss:$16 sps:$4 sm:$0xff]   ;;  %v1526_v8 = vld [vmem:[%s2517_s1 + $0x28] ss:$16 sps:$4 sm:$0xff]   ;;  %v1527_v9 = vld [vmem:[%s2517_s1 + $0x44] ss:$16 sps:$4 sm:$0xff]  }
   0x4   :  { %230 = vmatprep.subr.bf16.mxu0 %v1521_v5  ;;  %303 = vmatprep.subr.bf16.mxu1 %v1523_v6  ;;  %v1529_v10 = vld [vmem:[%s2517_s1 + $0x4c] ss:$16 sps:$4 sm:$0xff]   ;;  %v1531_v11 = vld [vmem:[%s2517_s1 + $0x40] ss:$16 sps:$4 sm:$0xff]   ;;  %v1532_v12 = vld [vmem:[%s2517_s1 + $0x48] ss:$16 sps:$4 sm:$0xff]  }
   0x5   :  { %v1533_v13 = vld [vmem:[%s2517_s1 + $0x64] ss:$16 sps:$4 sm:$0xff]   ;;  %v1535_v14 = vld [vmem:[%s2517_s1 + $0x6c] ss:$16 sps:$4 sm:$0xff]   ;;  %v1537_v15 = vld [vmem:[%s2517_s1 + $0x60] ss:$16 sps:$4 sm:$0xff]  }
   0x6   :  { %v1538_v16 = vld [vmem:[%s2517_s1 + $0x68] ss:$16 sps:$4 sm:$0xff]   ;;  %v1539_v17 = vld [vmem:[%s2517_s1 + $0x84] ss:$16 sps:$4 sm:$0xff]   ;;  %v1541_v18 = vld [vmem:[%s2517_s1 + $0x8c] ss:$16 sps:$4 sm:$0xff]  }
   0x7   :  { %231 = vmatpush1.bf16.msra.mxu0 %v1525_v7  ;;  %304 = vmatpush1.bf16.msra.mxu1 %v1526_v8  ;;  %v1543_v19 = vld [vmem:[%s2517_s1 + $0x80] ss:$16 sps:$4 sm:$0xff]   ;;  %v1544_v20 = vld [vmem:[%s2517_s1 + $0x88] ss:$16 sps:$4 sm:$0xff]   ;;  %v1545_v21 = vld [vmem:[%s2517_s1 + $0xa4] ss:$16 sps:$4 sm:$0xff]  }
   0x8   :  { %232 = vmatprep.subr.bf16.mxu0 %v1527_v9  ;;  %305 = vmatprep.subr.bf16.mxu1 %v1529_v10  ;;  %v1547_v22 = vld [vmem:[%s2517_s1 + $0xac] ss:$16 sps:$4 sm:$0xff]   ;;  %v1549_v23 = vld [vmem:[%s2517_s1 + $0xa0] ss:$16 sps:$4 sm:$0xff]   ;;  %v1550_v24 = vld [vmem:[%s2517_s1 + $0xa8] ss:$16 sps:$4 sm:$0xff]  }
   0x9   :  { %v1551_v25 = vld [vmem:[%s2517_s1 + $0xc4] ss:$16 sps:$4 sm:$0xff]   ;;  %v1553_v26 = vld [vmem:[%s2517_s1 + $0xcc] ss:$16 sps:$4 sm:$0xff]   ;;  %v1555_v27 = vld [vmem:[%s2517_s1 + $0xc0] ss:$16 sps:$4 sm:$0xff]  }
   0xa   :  { %v1556_v28 = vld [vmem:[%s2517_s1 + $0xc8] ss:$16 sps:$4 sm:$0xff]   ;;  %v1557_v29 = vld [vmem:[%s2517_s1 + $0xe4] ss:$16 sps:$4 sm:$0xff]   ;;  %v1559_v30 = vld [vmem:[%s2517_s1 + $0xec] ss:$16 sps:$4 sm:$0xff]  }
   0xb   :  { %233 = vmatpush1.bf16.msra.mxu0 %v1531_v11  ;;  %306 = vmatpush1.bf16.msra.mxu1 %v1532_v12  ;;  %v1561_v31 = vld [vmem:[%s2517_s1 + $0xe0] ss:$16 sps:$4 sm:$0xff]   ;;  %v1562_v32 = vld [vmem:[%s2517_s1 + $0xe8] ss:$16 sps:$4 sm:$0xff]   ;;  %v1862_v35 = vld [vmem:[%s2518_s2 + $0x4] ss:$16 sps:$4 sm:$0xff]  }
   0xc   :  { %234 = vmatprep.subr.bf16.mxu0 %v1533_v13  ;;  %307 = vmatprep.subr.bf16.mxu1 %v1535_v14  ;;  %v24_v33 = vld [vmem:[%s2519_s0] sm:$0xff]  ;;  %v25_v34 = vld [vmem:[%s2519_s0 + $0x8] sm:$0xff]  ;;  %v26_v44 = vld [vmem:[%s2519_s0 + $0x10] sm:$0xff]  ;;  %v1724_v14 = vmov 0.0|0.0  }
   0xd   :  { %v1867_v36 = vld [vmem:[%s2518_s2 + $0xc] ss:$16 sps:$4 sm:$0xff]   ;;  %v32_v37 = vpack.c.bf16 %v25_v34, %v24_v33  ;;  %v1872_v38 = vld [vmem:[%s2518_s2] ss:$16 sps:$4 sm:$0xff]   ;;  %v1877_v39 = vld [vmem:[%s2518_s2 + $0x8] ss:$16 sps:$4 sm:$0xff]  }
   0xe   :  { %v1884_v40 = vld [vmem:[%s2518_s2 + $0x24] ss:$16 sps:$4 sm:$0xff]   ;;  %v1889_v41 = vld [vmem:[%s2518_s2 + $0x2c] ss:$16 sps:$4 sm:$0xff]   ;;  %v1894_v42 = vld [vmem:[%s2518_s2 + $0x20] ss:$16 sps:$4 sm:$0xff]  }
   0xf   :  { %235 = vmatpush1.bf16.msra.mxu0 %v1537_v15  ;;  %308 = vmatpush1.bf16.msra.mxu1 %v1538_v16  ;;  %v1899_v43 = vld [vmem:[%s2518_s2 + $0x28] ss:$16 sps:$4 sm:$0xff]   ;;  %v1912_v46 = vld [vmem:[%s2518_s2 + $0x44] ss:$16 sps:$4 sm:$0xff]   ;;  %v1919_v47 = vld [vmem:[%s2518_s2 + $0x4c] ss:$16 sps:$4 sm:$0xff]  }
  0x10   :  { %236 = vmatprep.subr.bf16.mxu0 %v1539_v17  ;;  %309 = vmatprep.subr.bf16.mxu1 %v1541_v18  ;;  %v27_v45 = vld [vmem:[%s2519_s0 + $0x18] sm:$0xff]  ;;  %v1926_v49 = vld [vmem:[%s2518_s2 + $0x40] ss:$16 sps:$4 sm:$0xff]   ;;  %v1938_v51 = vld [vmem:[%s2518_s2 + $0x64] ss:$16 sps:$4 sm:$0xff]  }
  0x11   :  { %v33_v48 = vpack.c.bf16 %v27_v45, %v26_v44  ;;  %v1931_v50 = vld [vmem:[%s2518_s2 + $0x48] ss:$16 sps:$4 sm:$0xff]   ;;  %v1945_v52 = vld [vmem:[%s2518_s2 + $0x6c] ss:$16 sps:$4 sm:$0xff]   ;;  %v1950_v53 = vld [vmem:[%s2518_s2 + $0x60] ss:$16 sps:$4 sm:$0xff]  }
  0x12   :  { %v1955_v54 = vld [vmem:[%s2518_s2 + $0x68] ss:$16 sps:$4 sm:$0xff]   ;;  %v28_v55 = vld [vmem:[%s2519_s0 + $0x20] sm:$0xff]  ;;  %v1975_v58 = vld [vmem:[%s2518_s2 + $0x8c] ss:$16 sps:$4 sm:$0xff]  }
  0x13   :  { %237 = vmatpush1.bf16.msra.mxu0 %v1543_v19  ;;  %310 = vmatpush1.bf16.msra.mxu1 %v1544_v20  ;;  %v29_v56 = vld [vmem:[%s2519_s0 + $0x28] sm:$0xff]  ;;  %v1970_v57 = vld [vmem:[%s2518_s2 + $0x84] ss:$16 sps:$4 sm:$0xff]   ;;  %v1984_v60 = vld [vmem:[%s2518_s2 + $0x80] ss:$16 sps:$4 sm:$0xff]  }
  0x14   :  { %238 = vmatprep.subr.bf16.mxu0 %v1545_v21  ;;  %311 = vmatprep.subr.bf16.mxu1 %v1547_v22  ;;  %v34_v59 = vpack.c.bf16 %v29_v56, %v28_v55  ;;  %v1989_v61 = vld [vmem:[%s2518_s2 + $0x88] ss:$16 sps:$4 sm:$0xff]   ;;  %v1996_v62 = vld [vmem:[%s2518_s2 + $0xa4] ss:$16 sps:$4 sm:$0xff]   ;;  %v2001_v63 = vld [vmem:[%s2518_s2 + $0xac] ss:$16 sps:$4 sm:$0xff]  }
  0x15   :  { %v2006_v0 = vld [vmem:[%s2518_s2 + $0xa0] ss:$16 sps:$4 sm:$0xff]   ;;  %v2013_v2 = vld [vmem:[%s2518_s2 + $0xa8] ss:$16 sps:$4 sm:$0xff]   ;;  %v2026_v5 = vld [vmem:[%s2518_s2 + $0xc4] ss:$16 sps:$4 sm:$0xff]  }
  0x16   :  { %v30_v3 = vld [vmem:[%s2519_s0 + $0x30] sm:$0xff]  ;;  %v31_v4 = vld [vmem:[%s2519_s0 + $0x38] sm:$0xff] }
  0x17   :  { %239 = vmatpush1.bf16.msra.mxu0 %v1549_v23  ;;  %312 = vmatpush1.bf16.msra.mxu1 %v1550_v24  ;;  %v2031_v6 = vld [vmem:[%s2518_s2 + $0xcc] ss:$16 sps:$4 sm:$0xff]   ;;  %v35_v7 = vpack.c.bf16 %v31_v4, %v30_v3  ;;  %v2040_v8 = vld [vmem:[%s2518_s2 + $0xc0] ss:$16 sps:$4 sm:$0xff]   ;;  %v2045_v9 = vld [vmem:[%s2518_s2 + $0xc8] ss:$16 sps:$4 sm:$0xff]  }
  0x18   :  { %240 = vmatprep.subr.bf16.mxu0 %v1551_v25  ;;  %313 = vmatprep.subr.bf16.mxu1 %v1553_v26  ;;  %v2052_v10 = vld [vmem:[%s2518_s2 + $0xe4] ss:$16 sps:$4 sm:$0xff]   ;;  %v2057_v11 = vld [vmem:[%s2518_s2 + $0xec] ss:$16 sps:$4 sm:$0xff]   ;;  %v2064_v12 = vld [vmem:[%s2518_s2 + $0xe0] ss:$16 sps:$4 sm:$0xff]  }
  0x19   :  { %v2069_v13 = vld [vmem:[%s2518_s2 + $0xe8] ss:$16 sps:$4 sm:$0xff]  }
  0x1b   :  { %241 = vmatpush1.bf16.msra.mxu0 %v1555_v27  ;;  %314 = vmatpush1.bf16.msra.mxu1 %v1556_v28 }
  0x1c   :  { %242 = vmatprep.subr.bf16.mxu0 %v1557_v29  ;;  %315 = vmatprep.subr.bf16.mxu1 %v1559_v30 }
  0x1f   :  { %243 = vmatpush1.bf16.msra.mxu0 %v1561_v31  ;;  %316 = vmatpush1.bf16.msra.mxu1 %v1562_v32 }
  0x20   :  { %569 = vmatprep.subr.bf16.mxu0 %v1862_v35  ;;  %610 = vmatprep.subr.bf16.mxu1 %v1867_v36 }
  0x22   :  { %261 = vmatmul.mubr.bf16.vlgmr.msra.gmra.mrb[0].mxu0 %v32_v37  ;;  %334 = vmatmul.mubr.bf16.vlgmr.msra.gmra.mrb[0].mxu1 %v32_v37 }
  0x23   :  { %570 = vmatpush1.bf16.msra.mxu0 %v1872_v38  ;;  %611 = vmatpush1.bf16.msra.mxu1 %v1877_v39 }
  0x24   :  { %571 = vmatprep.subr.bf16.mxu0 %v1884_v40  ;;  %612 = vmatprep.subr.bf16.mxu1 %v1889_v41 }
  0x25   :  { %270 = vmatprep.mubr.bf16.mxu0 %v2523_v1  ;;  %343 = vmatprep.mubr.bf16.mxu1 %v2523_v1 }
  0x27   :  { %572 = vmatpush1.bf16.msra.mxu0 %v1894_v42  ;;  %613 = vmatpush1.bf16.msra.mxu1 %v1899_v43 }
  0x28   :  { %573 = vmatprep.subr.bf16.mxu0 %v1912_v46  ;;  %614 = vmatprep.subr.bf16.mxu1 %v1919_v47 }
  0x2a   :  { %271 = vmatmul.mubr.bf16.gmra.mrb[4].mxu0 %v33_v48  ;;  %344 = vmatmul.mubr.bf16.gmra.mrb[4].mxu1 %v33_v48 }
  0x2b   :  { %574 = vmatpush1.bf16.msra.mxu0 %v1926_v49  ;;  %615 = vmatpush1.bf16.msra.mxu1 %v1931_v50 }
  0x2c   :  { %575 = vmatprep.subr.bf16.mxu0 %v1938_v51  ;;  %616 = vmatprep.subr.bf16.mxu1 %v1945_v52 }
  0x2d   :  { %280 = vmatprep.mubr.bf16.mxu0 %v2523_v1  ;;  %353 = vmatprep.mubr.bf16.mxu1 %v2523_v1 }
  0x2f   :  { %576 = vmatpush1.bf16.msra.mxu0 %v1950_v53  ;;  %617 = vmatpush1.bf16.msra.mxu1 %v1955_v54 }
  0x30   :  { %577 = vmatprep.subr.bf16.mxu0 %v1970_v57  ;;  %618 = vmatprep.subr.bf16.mxu1 %v1975_v58 }
  0x32   :  { %281 = vmatmul.mubr.bf16.gmra.mrb[8].mxu0 %v34_v59  ;;  %354 = vmatmul.mubr.bf16.gmra.mrb[8].mxu1 %v34_v59 }
  0x33   :  { %578 = vmatpush1.bf16.msra.mxu0 %v1984_v60  ;;  %619 = vmatpush1.bf16.msra.mxu1 %v1989_v61 }
  0x34   :  { %579 = vmatprep.subr.bf16.mxu0 %v1996_v62  ;;  %620 = vmatprep.subr.bf16.mxu1 %v2001_v63 }
  0x35   :  { %290 = vmatprep.mubr.bf16.mxu0 %v2523_v1  ;;  %363 = vmatprep.mubr.bf16.mxu1 %v2523_v1 }
  0x37   :  { %580 = vmatpush1.bf16.msra.mxu0 %v2006_v0  ;;  %621 = vmatpush1.bf16.msra.mxu1 %v2013_v2 }
  0x38   :  { %581 = vmatprep.subr.bf16.mxu0 %v2026_v5  ;;  %622 = vmatprep.subr.bf16.mxu1 %v2031_v6 }
  0x3a   :  { %291 = vmatmul.mubr.bf16.gmra.mrb[12].mxu0 %v35_v7  ;;  %364 = vmatmul.mubr.bf16.gmra.mrb[12].mxu1 %v35_v7 }
  0x3b   :  { %582 = vmatpush1.bf16.msra.mxu0 %v2040_v8  ;;  %623 = vmatpush1.bf16.msra.mxu1 %v2045_v9 }
  0x3c   :  { %583 = vmatprep.subr.bf16.mxu0 %v2052_v10  ;;  %624 = vmatprep.subr.bf16.mxu1 %v2057_v11 }
  0x3d   :  { %601 = vmatprep.mubr.bf16.mxu0 %v2523_v1  ;;  %642 = vmatprep.mubr.bf16.mxu1 %v2523_v1 }
  0x3f   :  { %584 = vmatpush1.bf16.msra.mxu0 %v2064_v12  ;;  %625 = vmatpush1.bf16.msra.mxu1 %v2069_v13 }
  0x40   :  { %675 = vmatprep.subr.bf16.mxu0 %v1862_v35  ;;  %716 = vmatprep.subr.bf16.mxu1 %v1867_v36 }
  0x42   :  { %602 = vmatmul.mubr.bf16.vlgmr.msra.gmra.mrb[16].mxu0 %v1724_v14  ;;  %643 = vmatmul.mubr.bf16.vlgmr.msra.gmra.mrb[16].mxu1 %v1724_v14 }
  0x43   :  { %676 = vmatpush1.bf16.msra.mxu0 %v1872_v38  ;;  %717 = vmatpush1.bf16.msra.mxu1 %v1877_v39 }
  0x44   :  { %677 = vmatprep.subr.bf16.mxu0 %v1884_v40  ;;  %718 = vmatprep.subr.bf16.mxu1 %v1889_v41 }
  0x45   :  { %707 = vmatprep.mubr.bf16.mxu0 %v2523_v1  ;;  %748 = vmatprep.mubr.bf16.mxu1 %v2523_v1 }
  0x47   :  { %678 = vmatpush1.bf16.msra.mxu0 %v1894_v42  ;;  %719 = vmatpush1.bf16.msra.mxu1 %v1899_v43 }
  0x48   :  { %679 = vmatprep.subr.bf16.mxu0 %v1912_v46  ;;  %720 = vmatprep.subr.bf16.mxu1 %v1919_v47 }
  0x4b   :  { %680 = vmatpush1.bf16.msra.mxu0 %v1926_v49  ;;  %721 = vmatpush1.bf16.msra.mxu1 %v1931_v50 }
  0x4c   :  { %681 = vmatprep.subr.bf16.mxu0 %v1938_v51  ;;  %722 = vmatprep.subr.bf16.mxu1 %v1945_v52 }
  0x4f   :  { %682 = vmatpush1.bf16.msra.mxu0 %v1950_v53  ;;  %723 = vmatpush1.bf16.msra.mxu1 %v1955_v54 }
  0x50   :  { %683 = vmatprep.subr.bf16.mxu0 %v1970_v57  ;;  %724 = vmatprep.subr.bf16.mxu1 %v1975_v58 }
  0x53   :  { %684 = vmatpush1.bf16.msra.mxu0 %v1984_v60  ;;  %725 = vmatpush1.bf16.msra.mxu1 %v1989_v61 }
  0x54   :  { %685 = vmatprep.subr.bf16.mxu0 %v1996_v62  ;;  %726 = vmatprep.subr.bf16.mxu1 %v2001_v63 }
  0x57   :  { %686 = vmatpush1.bf16.msra.mxu0 %v2006_v0  ;;  %727 = vmatpush1.bf16.msra.mxu1 %v2013_v2 }
  0x58   :  { %687 = vmatprep.subr.bf16.mxu0 %v2026_v5  ;;  %728 = vmatprep.subr.bf16.mxu1 %v2031_v6 }
  0x5b   :  { %688 = vmatpush1.bf16.msra.mxu0 %v2040_v8  ;;  %729 = vmatpush1.bf16.msra.mxu1 %v2045_v9 }
  0x5c   :  { %689 = vmatprep.subr.bf16.mxu0 %v2052_v10  ;;  %730 = vmatprep.subr.bf16.mxu1 %v2057_v11 }
  0x5f   :  { %690 = vmatpush1.bf16.msra.mxu0 %v2064_v12  ;;  %731 = vmatpush1.bf16.msra.mxu1 %v2069_v13 }
  0x60   :  { %782 = vmatprep.subr.bf16.mxu0 %v1862_v35  ;;  %823 = vmatprep.subr.bf16.mxu1 %v1867_v36 }
  0xf5   :  { %v262_v15 = vpop.f32.mrb[0].mxu0  ;;  %v335_v16 = vpop.f32.mrb[0].mxu1 }
  0xf6   :  { %v264_v17 = vpop.f32.mrb[1].mxu0  ;;  %v337_v18 = vpop.f32.mrb[1].mxu1 }
  0xf7   :  { %v2113_v19 = vpop.f32.mrb[2].mxu0  ;;  %v2115_v20 = vpop.f32.mrb[2].mxu1 }
  0xf8   :  { %v2117_v21 = vpop.f32.mrb[3].mxu0  ;;  %v2119_v22 = vpop.f32.mrb[3].mxu1 }
  0xfd   :  { %v2121_v23 = vpop.f32.mrb[4].mxu0  ;;  %v2123_v24 = vpop.f32.mrb[4].mxu1 }
  0xfe   :  { %v2125_v25 = vpop.f32.mrb[5].mxu0  ;;  %v2127_v26 = vpop.f32.mrb[5].mxu1 }
  0xff   :  { %v2129_v27 = vpop.f32.mrb[6].mxu0  ;;  %v2131_v28 = vpop.f32.mrb[6].mxu1 }
 0x100   :  { %2525 = vst [vmem:[#allocation4_spill] sm:$0xff] %v2131_v28  ;;  %v2133_v29 = vpop.f32.mrb[7].mxu0  ;;  %v2135_v30 = vpop.f32.mrb[7].mxu1 }
 0x101   :  { %2526 = vst [vmem:[#allocation5_spill] sm:$0xff] %v2133_v29  ;;  %2527 = vst [vmem:[#allocation6_spill] sm:$0xff] %v2135_v30 }
 0x105   :  { %v2137_v31 = vpop.f32.mrb[8].mxu0  ;;  %v2139_v32 = vpop.f32.mrb[8].mxu1 }
 0x106   :  { %2528 = vst [vmem:[#allocation7_spill] sm:$0xff] %v2137_v31  ;;  %2529 = vst [vmem:[#allocation8_spill] sm:$0xff] %v2139_v32  ;;  %v2141_v33 = vpop.f32.mrb[9].mxu0  ;;  %v2143_v34 = vpop.f32.mrb[9].mxu1 }
 0x107   :  { %2530 = vst [vmem:[#allocation9_spill] sm:$0xff] %v2141_v33  ;;  %2531 = vst [vmem:[#allocation10_spill] sm:$0xff] %v2143_v34  ;;  %v2145_v37 = vpop.f32.mrb[10].mxu0  ;;  %v2147_v44 = vpop.f32.mrb[10].mxu1 }
 0x108   :  { %2532 = vst [vmem:[#allocation11_spill] sm:$0xff] %v2145_v37  ;;  %2533 = vst [vmem:[#allocation12_spill] sm:$0xff] %v2147_v44  ;;  %v2149_v45 = vpop.f32.mrb[11].mxu0  ;;  %v2151_v48 = vpop.f32.mrb[11].mxu1 }
 0x109   :  { %2534 = vst [vmem:[#allocation13_spill] sm:$0xff] %v2149_v45  ;;  %2535 = vst [vmem:[#allocation14_spill] sm:$0xff] %v2151_v48 }
 0x10d   :  { %v2153_v55 = vpop.f32.mrb[12].mxu0  ;;  %v2155_v56 = vpop.f32.mrb[12].mxu1 }
 0x10e   :  { %2536 = vst [vmem:[#allocation15_spill] sm:$0xff] %v2153_v55  ;;  %2537 = vst [vmem:[#allocation16_spill] sm:$0xff] %v2155_v56  ;;  %v2157_v59 = vpop.f32.mrb[13].mxu0  ;;  %v2159_v3 = vpop.f32.mrb[13].mxu1 }
 0x10f   :  { %2538 = vst [vmem:[#allocation17_spill] sm:$0xff] %v2157_v59  ;;  %2539 = vst [vmem:[#allocation18_spill] sm:$0xff] %v2159_v3  ;;  %v2161_v4 = vpop.f32.mrb[14].mxu0  ;;  %v2163_v7 = vpop.f32.mrb[14].mxu1 }
 0x110   :  { %2540 = vst [vmem:[#allocation19_spill] sm:$0xff] %v2161_v4  ;;  %2541 = vst [vmem:[#allocation20_spill] sm:$0xff] %v2163_v7  ;;  %v2165_v14 = vpop.f32.mrb[15].mxu0  ;;  %v2167_v1 = vpop.f32.mrb[15].mxu1 }
 0x111   :  { %2542 = vst [vmem:[#allocation21_spill] sm:$0xff] %v2165_v14  ;;  %2543 = vst [vmem:[#allocation22_spill] sm:$0xff] %v2167_v1 }
 0x115   :  { %v603_v44 = vpop.f32.mrb[16].mxu0  ;;  %v644_v45 = vpop.f32.mrb[16].mxu1 }
 0x116   :  { %v651_v37 = vadd.f32 %v603_v44, %v262_v15  ;;  %v653_v48 = vadd.f32 %v644_v45, %v335_v16  ;;  %v605_v34 = vpop.f32.mrb[17].mxu0  ;;  %v646_v55 = vpop.f32.mrb[17].mxu1 }
 0x117   :  { %v652_v33 = vadd.f32 %v605_v34, %v264_v17  ;;  %v654_v56 = vadd.f32 %v646_v55, %v337_v18  ;;  %v607_v32 = vpop.f32.mrb[18].mxu0  ;;  %v648_v59 = vpop.f32.mrb[18].mxu1 }
 0x118   :  { %v655_v31 = vmul.f32 0.5, %v651_v37  ;;  %v608_v3 = vpop.f32.mrb[19].mxu0  ;;  %v649_v30 = vpop.f32.mrb[19].mxu1 }
 0x119   :  { %v659_v4 = vmul.f32 0.5, %v652_v33  ;;  %v664_v14 = vmul.f32 0.5, %v654_v56 }
 0x11a   :  { %1611 = vtanh.f32 %v655_v31 }
 0x11b   :  { %1613 = vtanh.f32 %v659_v4 }
 0x11c   :  { %1615 = vtanh.f32 %v653_v48 }
 0x11d   :  { %1617 = vtanh.f32 %v664_v14 }
 0x124   :  { %v1612_v7 = vpop.eup %1611 }
 0x125   :  { %v1614_v1 = vpop.eup %1613  ;;  %v657_v29 = vmul.f32 0.5, %v1612_v7 }
 0x126   :  { %v661_v28 = vmul.f32 0.5, %v1614_v1  ;;  %v1616_v16 = vpop.eup %1615 }
 0x127   :  { %v658_v15 = vadd.f32 0.5, %v657_v29  ;;  %v1618_v30 = vpop.eup %1617 }
 0x128   :  { %v662_v44 = vadd.f32 0.5, %v661_v28  ;;  %v666_v33 = vmul.f32 0.5, %v1618_v30  ;;  %v2544_v28 = vmov 0  }
 0x129   :  { %v669_v17 = vmul.f32 %v1616_v16, %v658_v15 }
 0x12a   :  { %v668_v18 = vmul.f32 0.0, %v662_v44  ;;  %v667_v31 = vadd.f32 0.5, %v666_v33 }
 0x12c   :  { %v2169_v32 = vadd.f32 %v669_v17, %v668_v18 }
 0x12e   :  { %1619 = vtanh.f32 %v2169_v32 }
 0x138   :  { %v1620_v34 = vpop.eup %1619 }
 0x139   :  { %v672_v37 = vmul.f32 %v1620_v34, %v667_v31 }
 0x13b   :  { %673 = vst [vmem:[%s2520_s3] sm:$0xff] %v672_v37  ;;  %v674_v1 = vpack.c.bf16 %v672_v37, %v672_v37 }
 0x13d   :  { %708 = vmatmul.mubr.bf16.vlgmr.msra.gmra.mrb[20].mxu0 %v674_v1  ;;  %749 = vmatmul.mubr.bf16.vlgmr.msra.gmra.mrb[20].mxu1 %v674_v1 }
 0x13e   :  { %783 = vmatpush1.bf16.msra.mxu0 %v1872_v38  ;;  %824 = vmatpush1.bf16.msra.mxu1 %v1877_v39 }
 0x13f   :  { %784 = vmatprep.subr.bf16.mxu0 %v1884_v40  ;;  %825 = vmatprep.subr.bf16.mxu1 %v1889_v41 }
 0x140   :  { %814 = vmatprep.mubr.bf16.mxu0 %v2544_v28  ;;  %855 = vmatprep.mubr.bf16.mxu1 %v2544_v28 }
 0x142   :  { %785 = vmatpush1.bf16.msra.mxu0 %v1894_v42  ;;  %826 = vmatpush1.bf16.msra.mxu1 %v1899_v43 }
 0x143   :  { %786 = vmatprep.subr.bf16.mxu0 %v1912_v46  ;;  %827 = vmatprep.subr.bf16.mxu1 %v1919_v47 }
 0x146   :  { %787 = vmatpush1.bf16.msra.mxu0 %v1926_v49  ;;  %828 = vmatpush1.bf16.msra.mxu1 %v1931_v50 }
 0x147   :  { %788 = vmatprep.subr.bf16.mxu0 %v1938_v51  ;;  %829 = vmatprep.subr.bf16.mxu1 %v1945_v52 }
 0x14a   :  { %789 = vmatpush1.bf16.msra.mxu0 %v1950_v53  ;;  %830 = vmatpush1.bf16.msra.mxu1 %v1955_v54 }
 0x14b   :  { %790 = vmatprep.subr.bf16.mxu0 %v1970_v57  ;;  %831 = vmatprep.subr.bf16.mxu1 %v1975_v58 }
 0x14e   :  { %791 = vmatpush1.bf16.msra.mxu0 %v1984_v60  ;;  %832 = vmatpush1.bf16.msra.mxu1 %v1989_v61 }
 0x14f   :  { %792 = vmatprep.subr.bf16.mxu0 %v1996_v62  ;;  %833 = vmatprep.subr.bf16.mxu1 %v2001_v63 }
 0x152   :  { %793 = vmatpush1.bf16.msra.mxu0 %v2006_v0  ;;  %834 = vmatpush1.bf16.msra.mxu1 %v2013_v2 }
 0x153   :  { %794 = vmatprep.subr.bf16.mxu0 %v2026_v5  ;;  %835 = vmatprep.subr.bf16.mxu1 %v2031_v6 }
 0x156   :  { %795 = vmatpush1.bf16.msra.mxu0 %v2040_v8  ;;  %836 = vmatpush1.bf16.msra.mxu1 %v2045_v9 }
 0x157   :  { %796 = vmatprep.subr.bf16.mxu0 %v2052_v10  ;;  %837 = vmatprep.subr.bf16.mxu1 %v2057_v11 }
 0x15a   :  { %797 = vmatpush1.bf16.msra.mxu0 %v2064_v12  ;;  %838 = vmatpush1.bf16.msra.mxu1 %v2069_v13 }
 0x15b   :  { %889 = vmatprep.subr.bf16.mxu0 %v1862_v35  ;;  %930 = vmatprep.subr.bf16.mxu1 %v1867_v36 }
 0x210   :  { %v709_v29 = vpop.f32.mrb[20].mxu0  ;;  %v750_v45 = vpop.f32.mrb[20].mxu1 }
 0x211   :  { %v757_v48 = vadd.f32 %v709_v29, %v2113_v19  ;;  %v759_v55 = vadd.f32 %v750_v45, %v2115_v20  ;;  %v711_v56 = vpop.f32.mrb[21].mxu0  ;;  %v752_v59 = vpop.f32.mrb[21].mxu1 }
 0x212   :  { %v758_v3 = vadd.f32 %v711_v56, %v2117_v21  ;;  %v760_v4 = vadd.f32 %v752_v59, %v2119_v22  ;;  %v713_v7 = vpop.f32.mrb[22].mxu0  ;;  %v754_v14 = vpop.f32.mrb[22].mxu1 }
 0x213   :  { %v761_v15 = vmul.f32 0.5, %v757_v48  ;;  %v714_v16 = vpop.f32.mrb[23].mxu0  ;;  %v755_v44 = vpop.f32.mrb[23].mxu1 }
 0x214   :  { %v765_v17 = vmul.f32 0.5, %v758_v3  ;;  %v770_v18 = vmul.f32 0.5, %v760_v4 }
 0x215   :  { %1621 = vtanh.f32 %v761_v15 }
 0x216   :  { %1623 = vtanh.f32 %v765_v17 }
 0x217   :  { %1625 = vtanh.f32 %v759_v55 }
 0x218   :  { %1627 = vtanh.f32 %v770_v18 }
 0x21f   :  { %v1622_v30 = vpop.eup %1621 }
 0x220   :  { %v1624_v19 = vpop.eup %1623  ;;  %v763_v33 = vmul.f32 0.5, %v1622_v30 }
 0x221   :  { %v767_v20 = vmul.f32 0.5, %v1624_v19  ;;  %v1626_v34 = vpop.eup %1625 }
 0x222   :  { %v764_v31 = vadd.f32 0.5, %v763_v33  ;;  %v1628_v29 = vpop.eup %1627 }
 0x223   :  { %v768_v21 = vadd.f32 0.5, %v767_v20  ;;  %v772_v45 = vmul.f32 0.5, %v1628_v29 }
 0x224   :  { %v775_v37 = vmul.f32 %v1626_v34, %v764_v31 }
 0x225   :  { %v774_v22 = vmul.f32 %v768_v21, %v2169_v32  ;;  %v773_v48 = vadd.f32 0.5, %v772_v45 }
 0x227   :  { %v2214_v1 = vadd.f32 %v775_v37, %v774_v22 }
 0x229   :  { %1629 = vtanh.f32 %v2214_v1 }
 0x233   :  { %v1630_v55 = vpop.eup %1629 }
 0x234   :  { %v778_v56 = vmul.f32 %v1630_v55, %v773_v48 }
 0x236   :  { %1506 = vst [vmem:[%s2520_s3 + $0x8] sm:$0xff] %v778_v56  ;;  %v781_v59 = vpack.c.bf16 %v778_v56, %v778_v56 }
 0x238   :  { %815 = vmatmul.mubr.bf16.vlgmr.msra.gmra.mrb[24].mxu0 %v781_v59  ;;  %856 = vmatmul.mubr.bf16.vlgmr.msra.gmra.mrb[24].mxu1 %v781_v59 }
 0x239   :  { %890 = vmatpush1.bf16.msra.mxu0 %v1872_v38  ;;  %931 = vmatpush1.bf16.msra.mxu1 %v1877_v39 }
 0x23a   :  { %891 = vmatprep.subr.bf16.mxu0 %v1884_v40  ;;  %932 = vmatprep.subr.bf16.mxu1 %v1889_v41 }
 0x23b   :  { %921 = vmatprep.mubr.bf16.mxu0 %v2544_v28  ;;  %962 = vmatprep.mubr.bf16.mxu1 %v2544_v28 }
 0x23d   :  { %892 = vmatpush1.bf16.msra.mxu0 %v1894_v42  ;;  %933 = vmatpush1.bf16.msra.mxu1 %v1899_v43 }
 0x23e   :  { %893 = vmatprep.subr.bf16.mxu0 %v1912_v46  ;;  %934 = vmatprep.subr.bf16.mxu1 %v1919_v47 }
 0x241   :  { %894 = vmatpush1.bf16.msra.mxu0 %v1926_v49  ;;  %935 = vmatpush1.bf16.msra.mxu1 %v1931_v50 }
 0x242   :  { %895 = vmatprep.subr.bf16.mxu0 %v1938_v51  ;;  %936 = vmatprep.subr.bf16.mxu1 %v1945_v52 }
 0x245   :  { %896 = vmatpush1.bf16.msra.mxu0 %v1950_v53  ;;  %937 = vmatpush1.bf16.msra.mxu1 %v1955_v54 }
 0x246   :  { %897 = vmatprep.subr.bf16.mxu0 %v1970_v57  ;;  %938 = vmatprep.subr.bf16.mxu1 %v1975_v58 }
 0x249   :  { %898 = vmatpush1.bf16.msra.mxu0 %v1984_v60  ;;  %939 = vmatpush1.bf16.msra.mxu1 %v1989_v61 }
 0x24a   :  { %899 = vmatprep.subr.bf16.mxu0 %v1996_v62  ;;  %940 = vmatprep.subr.bf16.mxu1 %v2001_v63 }
 0x24d   :  { %900 = vmatpush1.bf16.msra.mxu0 %v2006_v0  ;;  %941 = vmatpush1.bf16.msra.mxu1 %v2013_v2 }
 0x24e   :  { %901 = vmatprep.subr.bf16.mxu0 %v2026_v5  ;;  %942 = vmatprep.subr.bf16.mxu1 %v2031_v6 }
 0x251   :  { %902 = vmatpush1.bf16.msra.mxu0 %v2040_v8  ;;  %943 = vmatpush1.bf16.msra.mxu1 %v2045_v9 }
 0x252   :  { %903 = vmatprep.subr.bf16.mxu0 %v2052_v10  ;;  %944 = vmatprep.subr.bf16.mxu1 %v2057_v11 }
 0x255   :  { %904 = vmatpush1.bf16.msra.mxu0 %v2064_v12  ;;  %945 = vmatpush1.bf16.msra.mxu1 %v2069_v13 }
 0x256   :  { %996 = vmatprep.subr.bf16.mxu0 %v1862_v35  ;;  %1037 = vmatprep.subr.bf16.mxu1 %v1867_v36 }
 0x30b   :  { %v816_v32 = vpop.f32.mrb[24].mxu0  ;;  %v857_v3 = vpop.f32.mrb[24].mxu1 }
 0x30c   :  { %v864_v4 = vadd.f32 %v816_v32, %v2121_v23  ;;  %v866_v7 = vadd.f32 %v857_v3, %v2123_v24  ;;  %v818_v14 = vpop.f32.mrb[25].mxu0  ;;  %v859_v15 = vpop.f32.mrb[25].mxu1 }
 0x30d   :  { %v865_v16 = vadd.f32 %v818_v14, %v2125_v25  ;;  %v867_v44 = vadd.f32 %v859_v15, %v2127_v26  ;;  %v820_v17 = vpop.f32.mrb[26].mxu0  ;;  %v861_v18 = vpop.f32.mrb[26].mxu1  ;;  %v2545_v14 = vld [vmem:[#allocation4_spill] sm:$0xff] }
 0x30e   :  { %v868_v30 = vmul.f32 0.5, %v864_v4  ;;  %v821_v19 = vpop.f32.mrb[27].mxu0  ;;  %v862_v33 = vpop.f32.mrb[27].mxu1  ;;  %v2546_v17 = vld [vmem:[#allocation5_spill] sm:$0xff] }
 0x30f   :  { %v872_v20 = vmul.f32 0.5, %v865_v16  ;;  %v877_v31 = vmul.f32 0.5, %v867_v44 }
 0x310   :  { %1631 = vtanh.f32 %v868_v30  ;;  %v2547_v30 = vld [vmem:[#allocation6_spill] sm:$0xff] }
 0x311   :  { %1633 = vtanh.f32 %v872_v20 }
 0x312   :  { %1635 = vtanh.f32 %v866_v7 }
 0x313   :  { %1637 = vtanh.f32 %v877_v31 }
 0x31a   :  { %v1632_v34 = vpop.eup %1631 }
 0x31b   :  { %v1634_v23 = vpop.eup %1633  ;;  %v870_v21 = vmul.f32 0.5, %v1632_v34 }
 0x31c   :  { %v874_v24 = vmul.f32 0.5, %v1634_v23  ;;  %v1636_v22 = vpop.eup %1635 }
 0x31d   :  { %v871_v37 = vadd.f32 0.5, %v870_v21  ;;  %v1638_v48 = vpop.eup %1637 }
 0x31e   :  { %v875_v25 = vadd.f32 0.5, %v874_v24  ;;  %v879_v55 = vmul.f32 0.5, %v1638_v48 }
 0x31f   :  { %v882_v29 = vmul.f32 %v1636_v22, %v871_v37 }
 0x320   :  { %v881_v26 = vmul.f32 %v875_v25, %v2214_v1  ;;  %v880_v56 = vadd.f32 0.5, %v879_v55 }
 0x322   :  { %v2259_v45 = vadd.f32 %v882_v29, %v881_v26 }
 0x324   :  { %1639 = vtanh.f32 %v2259_v45 }
 0x32e   :  { %v1640_v59 = vpop.eup %1639 }
 0x32f   :  { %v885_v32 = vmul.f32 %v1640_v59, %v880_v56 }
 0x331   :  { %1507 = vst [vmem:[%s2520_s3 + $0x10] sm:$0xff] %v885_v32  ;;  %v888_v3 = vpack.c.bf16 %v885_v32, %v885_v32 }
 0x333   :  { %922 = vmatmul.mubr.bf16.vlgmr.msra.gmra.mrb[28].mxu0 %v888_v3  ;;  %963 = vmatmul.mubr.bf16.vlgmr.msra.gmra.mrb[28].mxu1 %v888_v3 }
 0x334   :  { %997 = vmatpush1.bf16.msra.mxu0 %v1872_v38  ;;  %1038 = vmatpush1.bf16.msra.mxu1 %v1877_v39 }
 0x335   :  { %998 = vmatprep.subr.bf16.mxu0 %v1884_v40  ;;  %1039 = vmatprep.subr.bf16.mxu1 %v1889_v41 }
 0x336   :  { %1028 = vmatprep.mubr.bf16.mxu0 %v2544_v28  ;;  %1069 = vmatprep.mubr.bf16.mxu1 %v2544_v28 }
 0x338   :  { %999 = vmatpush1.bf16.msra.mxu0 %v1894_v42  ;;  %1040 = vmatpush1.bf16.msra.mxu1 %v1899_v43 }
 0x339   :  { %1000 = vmatprep.subr.bf16.mxu0 %v1912_v46  ;;  %1041 = vmatprep.subr.bf16.mxu1 %v1919_v47 }
 0x33c   :  { %1001 = vmatpush1.bf16.msra.mxu0 %v1926_v49  ;;  %1042 = vmatpush1.bf16.msra.mxu1 %v1931_v50 }
 0x33d   :  { %1002 = vmatprep.subr.bf16.mxu0 %v1938_v51  ;;  %1043 = vmatprep.subr.bf16.mxu1 %v1945_v52 }
 0x340   :  { %1003 = vmatpush1.bf16.msra.mxu0 %v1950_v53  ;;  %1044 = vmatpush1.bf16.msra.mxu1 %v1955_v54 }
 0x341   :  { %1004 = vmatprep.subr.bf16.mxu0 %v1970_v57  ;;  %1045 = vmatprep.subr.bf16.mxu1 %v1975_v58 }
 0x344   :  { %1005 = vmatpush1.bf16.msra.mxu0 %v1984_v60  ;;  %1046 = vmatpush1.bf16.msra.mxu1 %v1989_v61 }
 0x345   :  { %1006 = vmatprep.subr.bf16.mxu0 %v1996_v62  ;;  %1047 = vmatprep.subr.bf16.mxu1 %v2001_v63 }
 0x348   :  { %1007 = vmatpush1.bf16.msra.mxu0 %v2006_v0  ;;  %1048 = vmatpush1.bf16.msra.mxu1 %v2013_v2 }
 0x349   :  { %1008 = vmatprep.subr.bf16.mxu0 %v2026_v5  ;;  %1049 = vmatprep.subr.bf16.mxu1 %v2031_v6 }
 0x34c   :  { %1009 = vmatpush1.bf16.msra.mxu0 %v2040_v8  ;;  %1050 = vmatpush1.bf16.msra.mxu1 %v2045_v9 }
 0x34d   :  { %1010 = vmatprep.subr.bf16.mxu0 %v2052_v10  ;;  %1051 = vmatprep.subr.bf16.mxu1 %v2057_v11 }
 0x350   :  { %1011 = vmatpush1.bf16.msra.mxu0 %v2064_v12  ;;  %1052 = vmatpush1.bf16.msra.mxu1 %v2069_v13 }
 0x351   :  { %1103 = vmatprep.subr.bf16.mxu0 %v1862_v35  ;;  %1144 = vmatprep.subr.bf16.mxu1 %v1867_v36 }
 0x406   :  { %v923_v1 = vpop.f32.mrb[28].mxu0  ;;  %v964_v4 = vpop.f32.mrb[28].mxu1 }
 0x407   :  { %v971_v7 = vadd.f32 %v923_v1, %v2129_v27  ;;  %v973_v15 = vadd.f32 %v964_v4, %v2545_v14  ;;  %v925_v16 = vpop.f32.mrb[29].mxu0  ;;  %v966_v44 = vpop.f32.mrb[29].mxu1 }
 0x408   :  { %v972_v18 = vadd.f32 %v925_v16, %v2546_v17  ;;  %v974_v19 = vadd.f32 %v966_v44, %v2547_v30  ;;  %v927_v33 = vpop.f32.mrb[30].mxu0  ;;  %v968_v20 = vpop.f32.mrb[30].mxu1  ;;  %v2548_v16 = vld [vmem:[#allocation7_spill] sm:$0xff]  ;;  %v2549_v17 = vld [vmem:[#allocation8_spill] sm:$0xff] }
 0x409   :  { %v975_v31 = vmul.f32 0.5, %v971_v7  ;;  %v928_v34 = vpop.f32.mrb[31].mxu0  ;;  %v969_v23 = vpop.f32.mrb[31].mxu1  ;;  %v2550_v33 = vld [vmem:[#allocation9_spill] sm:$0xff] }
 0x40a   :  { %v979_v21 = vmul.f32 0.5, %v972_v18  ;;  %v984_v24 = vmul.f32 0.5, %v974_v19 }
 0x40b   :  { %1641 = vtanh.f32 %v975_v31  ;;  %v2551_v31 = vld [vmem:[#allocation10_spill] sm:$0xff] }
 0x40c   :  { %1643 = vtanh.f32 %v979_v21 }
 0x40d   :  { %1645 = vtanh.f32 %v973_v15 }
 0x40e   :  { %1647 = vtanh.f32 %v984_v24 }
 0x415   :  { %v1642_v37 = vpop.eup %1641 }
 0x416   :  { %v1644_v27 = vpop.eup %1643  ;;  %v977_v22 = vmul.f32 0.5, %v1642_v37 }
 0x417   :  { %v981_v25 = vmul.f32 0.5, %v1644_v27  ;;  %v1646_v26 = vpop.eup %1645 }
 0x418   :  { %v978_v29 = vadd.f32 0.5, %v977_v22  ;;  %v1648_v32 = vpop.eup %1647 }
 0x419   :  { %v982_v48 = vadd.f32 0.5, %v981_v25  ;;  %v986_v3 = vmul.f32 0.5, %v1648_v32 }
 0x41a   :  { %v989_v55 = vmul.f32 %v1646_v26, %v978_v29 }
 0x41b   :  { %v988_v56 = vmul.f32 %v982_v48, %v2259_v45  ;;  %v987_v1 = vadd.f32 0.5, %v986_v3 }
 0x41d   :  { %v2304_v59 = vadd.f32 %v989_v55, %v988_v56 }
 0x41f   :  { %1649 = vtanh.f32 %v2304_v59 }
 0x429   :  { %v1650_v4 = vpop.eup %1649 }
 0x42a   :  { %v992_v7 = vmul.f32 %v1650_v4, %v987_v1 }
 0x42c   :  { %1508 = vst [vmem:[%s2520_s3 + $0x18] sm:$0xff] %v992_v7  ;;  %v995_v14 = vpack.c.bf16 %v992_v7, %v992_v7 }
 0x42e   :  { %1029 = vmatmul.mubr.bf16.vlgmr.msra.gmra.mrb[32].mxu0 %v995_v14  ;;  %1070 = vmatmul.mubr.bf16.vlgmr.msra.gmra.mrb[32].mxu1 %v995_v14 }
 0x42f   :  { %1104 = vmatpush1.bf16.msra.mxu0 %v1872_v38  ;;  %1145 = vmatpush1.bf16.msra.mxu1 %v1877_v39 }
 0x430   :  { %1105 = vmatprep.subr.bf16.mxu0 %v1884_v40  ;;  %1146 = vmatprep.subr.bf16.mxu1 %v1889_v41 }
 0x431   :  { %1135 = vmatprep.mubr.bf16.mxu0 %v2544_v28  ;;  %1176 = vmatprep.mubr.bf16.mxu1 %v2544_v28 }
 0x433   :  { %1106 = vmatpush1.bf16.msra.mxu0 %v1894_v42  ;;  %1147 = vmatpush1.bf16.msra.mxu1 %v1899_v43 }
 0x434   :  { %1107 = vmatprep.subr.bf16.mxu0 %v1912_v46  ;;  %1148 = vmatprep.subr.bf16.mxu1 %v1919_v47 }
 0x437   :  { %1108 = vmatpush1.bf16.msra.mxu0 %v1926_v49  ;;  %1149 = vmatpush1.bf16.msra.mxu1 %v1931_v50 }
 0x438   :  { %1109 = vmatprep.subr.bf16.mxu0 %v1938_v51  ;;  %1150 = vmatprep.subr.bf16.mxu1 %v1945_v52 }
 0x43b   :  { %1110 = vmatpush1.bf16.msra.mxu0 %v1950_v53  ;;  %1151 = vmatpush1.bf16.msra.mxu1 %v1955_v54 }
 0x43c   :  { %1111 = vmatprep.subr.bf16.mxu0 %v1970_v57  ;;  %1152 = vmatprep.subr.bf16.mxu1 %v1975_v58 }
 0x43f   :  { %1112 = vmatpush1.bf16.msra.mxu0 %v1984_v60  ;;  %1153 = vmatpush1.bf16.msra.mxu1 %v1989_v61 }
 0x440   :  { %1113 = vmatprep.subr.bf16.mxu0 %v1996_v62  ;;  %1154 = vmatprep.subr.bf16.mxu1 %v2001_v63 }
 0x443   :  { %1114 = vmatpush1.bf16.msra.mxu0 %v2006_v0  ;;  %1155 = vmatpush1.bf16.msra.mxu1 %v2013_v2 }
 0x444   :  { %1115 = vmatprep.subr.bf16.mxu0 %v2026_v5  ;;  %1156 = vmatprep.subr.bf16.mxu1 %v2031_v6 }
 0x447   :  { %1116 = vmatpush1.bf16.msra.mxu0 %v2040_v8  ;;  %1157 = vmatpush1.bf16.msra.mxu1 %v2045_v9 }
 0x448   :  { %1117 = vmatprep.subr.bf16.mxu0 %v2052_v10  ;;  %1158 = vmatprep.subr.bf16.mxu1 %v2057_v11 }
 0x44b   :  { %1118 = vmatpush1.bf16.msra.mxu0 %v2064_v12  ;;  %1159 = vmatpush1.bf16.msra.mxu1 %v2069_v13 }
 0x44c   :  { %1210 = vmatprep.subr.bf16.mxu0 %v1862_v35  ;;  %1251 = vmatprep.subr.bf16.mxu1 %v1867_v36 }
 0x501   :  { %v1030_v45 = vpop.f32.mrb[32].mxu0  ;;  %v1071_v15 = vpop.f32.mrb[32].mxu1 }
 0x502   :  { %v1078_v44 = vadd.f32 %v1030_v45, %v2548_v16  ;;  %v1080_v18 = vadd.f32 %v1071_v15, %v2549_v17  ;;  %v1032_v30 = vpop.f32.mrb[33].mxu0  ;;  %v1073_v19 = vpop.f32.mrb[33].mxu1 }
 0x503   :  { %v1079_v20 = vadd.f32 %v1032_v30, %v2550_v33  ;;  %v1081_v34 = vadd.f32 %v1073_v19, %v2551_v31  ;;  %v1034_v23 = vpop.f32.mrb[34].mxu0  ;;  %v1075_v21 = vpop.f32.mrb[34].mxu1  ;;  %v1694_v31 = vld [vmem:[%s2518_s2 + $0x8] ss:$16 sps:$4 sm:$0xff]  }
 0x504   :  { %v1082_v24 = vmul.f32 0.5, %v1078_v44  ;;  %v1035_v37 = vpop.f32.mrb[35].mxu0  ;;  %v1076_v27 = vpop.f32.mrb[35].mxu1  ;;  %v1696_v23 = vld [vmem:[%s2518_s2 + $0x2c] ss:$16 sps:$4 sm:$0xff]  }
 0x505   :  { %v1086_v35 = vmul.f32 0.5, %v1079_v20  ;;  %v1091_v36 = vmul.f32 0.5, %v1081_v34  ;;  %v1693_v20 = vld [vmem:[%s2518_s2] ss:$16 sps:$4 sm:$0xff]   ;;  %v1695_v34 = vld [vmem:[%s2518_s2 + $0x24] ss:$16 sps:$4 sm:$0xff]  }
 0x506   :  { %1651 = vtanh.f32 %v1082_v24  ;;  %v1697_v21 = vld [vmem:[%s2518_s2 + $0x20] ss:$16 sps:$4 sm:$0xff]   ;;  %v1698_v24 = vld [vmem:[%s2518_s2 + $0x28] ss:$16 sps:$4 sm:$0xff]   ;;  %v1699_v37 = vld [vmem:[%s2518_s2 + $0x44] ss:$16 sps:$4 sm:$0xff]  }
 0x507   :  { %1653 = vtanh.f32 %v1086_v35  ;;  %v1700_v27 = vld [vmem:[%s2518_s2 + $0x4c] ss:$16 sps:$4 sm:$0xff]   ;;  %v1702_v35 = vld [vmem:[%s2518_s2 + $0x48] ss:$16 sps:$4 sm:$0xff]  }
 0x508   :  { %1655 = vtanh.f32 %v1080_v18 }
 0x509   :  { %1657 = vtanh.f32 %v1091_v36  ;;  %v1703_v36 = vld [vmem:[%s2518_s2 + $0x64] ss:$16 sps:$4 sm:$0xff]  }
 0x510   :  { %v1652_v22 = vpop.eup %1651 }
 0x511   :  { %v1654_v25 = vpop.eup %1653  ;;  %v1084_v29 = vmul.f32 0.5, %v1652_v22  ;;  %v1704_v22 = vld [vmem:[%s2518_s2 + $0x6c] ss:$16 sps:$4 sm:$0xff]  }
 0x512   :  { %v1088_v26 = vmul.f32 0.5, %v1654_v25  ;;  %v1656_v55 = vpop.eup %1655  ;;  %v1705_v25 = vld [vmem:[%s2518_s2 + $0x60] ss:$16 sps:$4 sm:$0xff]  }
 0x513   :  { %v1085_v48 = vadd.f32 0.5, %v1084_v29  ;;  %v1658_v4 = vpop.eup %1657  ;;  %v1706_v29 = vld [vmem:[%s2518_s2 + $0x68] ss:$16 sps:$4 sm:$0xff]  }
 0x514   :  { %v1089_v56 = vadd.f32 0.5, %v1088_v26  ;;  %v1093_v7 = vmul.f32 0.5, %v1658_v4  ;;  %v1707_v26 = vld [vmem:[%s2518_s2 + $0x84] ss:$16 sps:$4 sm:$0xff]   ;;  %v1714_v4 = vld [vmem:[%s2518_s2 + $0xa8] ss:$16 sps:$4 sm:$0xff]  }
 0x515   :  { %v1096_v32 = vmul.f32 %v1656_v55, %v1085_v48  ;;  %v1708_v48 = vld [vmem:[%s2518_s2 + $0x8c] ss:$16 sps:$4 sm:$0xff]   ;;  %v1709_v55 = vld [vmem:[%s2518_s2 + $0x80] ss:$16 sps:$4 sm:$0xff]  }
 0x516   :  { %v1095_v3 = vmul.f32 %v1089_v56, %v2304_v59  ;;  %v1094_v14 = vadd.f32 0.5, %v1093_v7  ;;  %v1710_v56 = vld [vmem:[%s2518_s2 + $0x88] ss:$16 sps:$4 sm:$0xff]   ;;  %v1715_v7 = vld [vmem:[%s2518_s2 + $0xc4] ss:$16 sps:$4 sm:$0xff]  }
 0x518   :  { %v2349_v1 = vadd.f32 %v1096_v32, %v1095_v3  ;;  %v1711_v32 = vld [vmem:[%s2518_s2 + $0xa4] ss:$16 sps:$4 sm:$0xff]   ;;  %v1712_v3 = vld [vmem:[%s2518_s2 + $0xac] ss:$16 sps:$4 sm:$0xff]  }
 0x51a   :  { %1659 = vtanh.f32 %v2349_v1 }
 0x524   :  { %v1660_v45 = vpop.eup %1659 }
 0x525   :  { %v1099_v15 = vmul.f32 %v1660_v45, %v1094_v14  ;;  %v1716_v14 = vld [vmem:[%s2518_s2 + $0xcc] ss:$16 sps:$4 sm:$0xff]   ;;  %v1717_v45 = vld [vmem:[%s2518_s2 + $0xc0] ss:$16 sps:$4 sm:$0xff]  }
 0x527   :  { %1509 = vst [vmem:[%s2520_s3 + $0x20] sm:$0xff] %v1099_v15  ;;  %v1102_v16 = vpack.c.bf16 %v1099_v15, %v1099_v15  ;;  %v1718_v15 = vld [vmem:[%s2518_s2 + $0xc8] ss:$16 sps:$4 sm:$0xff]  }
 0x529   :  { %1136 = vmatmul.mubr.bf16.vlgmr.msra.gmra.mrb[36].mxu0 %v1102_v16  ;;  %1177 = vmatmul.mubr.bf16.vlgmr.msra.gmra.mrb[36].mxu1 %v1102_v16  ;;  %v1719_v16 = vld [vmem:[%s2518_s2 + $0xe4] ss:$16 sps:$4 sm:$0xff]  }
 0x52a   :  { %1211 = vmatpush1.bf16.msra.mxu0 %v1872_v38  ;;  %1252 = vmatpush1.bf16.msra.mxu1 %v1877_v39  ;;  %v1691_v38 = vld [vmem:[%s2518_s2 + $0x4] ss:$16 sps:$4 sm:$0xff]   ;;  %v1692_v39 = vld [vmem:[%s2518_s2 + $0xc] ss:$16 sps:$4 sm:$0xff]  }
 0x52b   :  { %1212 = vmatprep.subr.bf16.mxu0 %v1884_v40  ;;  %1253 = vmatprep.subr.bf16.mxu1 %v1889_v41 }
 0x52c   :  { %1242 = vmatprep.mubr.bf16.mxu0 %v2544_v28  ;;  %1283 = vmatprep.mubr.bf16.mxu1 %v2544_v28 }
 0x52e   :  { %1213 = vmatpush1.bf16.msra.mxu0 %v1894_v42  ;;  %1254 = vmatpush1.bf16.msra.mxu1 %v1899_v43  ;;  %v2552_v42 = vld [vmem:[#allocation11_spill] sm:$0xff] }
 0x52f   :  { %1214 = vmatprep.subr.bf16.mxu0 %v1912_v46  ;;  %1255 = vmatprep.subr.bf16.mxu1 %v1919_v47  ;;  %v2553_v46 = vld [vmem:[#allocation12_spill] sm:$0xff] }
 0x532   :  { %1215 = vmatpush1.bf16.msra.mxu0 %v1926_v49  ;;  %1256 = vmatpush1.bf16.msra.mxu1 %v1931_v50 }
 0x533   :  { %1216 = vmatprep.subr.bf16.mxu0 %v1938_v51  ;;  %1257 = vmatprep.subr.bf16.mxu1 %v1945_v52  ;;  %v2554_v51 = vld [vmem:[#allocation13_spill] sm:$0xff] }
 0x536   :  { %1217 = vmatpush1.bf16.msra.mxu0 %v1950_v53  ;;  %1258 = vmatpush1.bf16.msra.mxu1 %v1955_v54  ;;  %v2555_v53 = vld [vmem:[#allocation14_spill] sm:$0xff] }
 0x537   :  { %1218 = vmatprep.subr.bf16.mxu0 %v1970_v57  ;;  %1259 = vmatprep.subr.bf16.mxu1 %v1975_v58 }
 0x53a   :  { %1219 = vmatpush1.bf16.msra.mxu0 %v1984_v60  ;;  %1260 = vmatpush1.bf16.msra.mxu1 %v1989_v61 }
 0x53b   :  { %1220 = vmatprep.subr.bf16.mxu0 %v1996_v62  ;;  %1261 = vmatprep.subr.bf16.mxu1 %v2001_v63 }
 0x53e   :  { %1221 = vmatpush1.bf16.msra.mxu0 %v2006_v0  ;;  %1262 = vmatpush1.bf16.msra.mxu1 %v2013_v2 }
 0x53f   :  { %1222 = vmatprep.subr.bf16.mxu0 %v2026_v5  ;;  %1263 = vmatprep.subr.bf16.mxu1 %v2031_v6 }
 0x542   :  { %1223 = vmatpush1.bf16.msra.mxu0 %v2040_v8  ;;  %1264 = vmatpush1.bf16.msra.mxu1 %v2045_v9 }
 0x543   :  { %1224 = vmatprep.subr.bf16.mxu0 %v2052_v10  ;;  %1265 = vmatprep.subr.bf16.mxu1 %v2057_v11 }
 0x546   :  { %1225 = vmatpush1.bf16.msra.mxu0 %v2064_v12  ;;  %1266 = vmatpush1.bf16.msra.mxu1 %v2069_v13 }
 0x547   :  { %1317 = vmatprep.subr.bf16.mxu0 %v1691_v38  ;;  %1358 = vmatprep.subr.bf16.mxu1 %v1692_v39  ;;  %v1720_v38 = vld [vmem:[%s2518_s2 + $0xec] ss:$16 sps:$4 sm:$0xff]   ;;  %v1721_v39 = vld [vmem:[%s2518_s2 + $0xe0] ss:$16 sps:$4 sm:$0xff]  }
 0x5fc   :  { %v1137_v40 = vpop.f32.mrb[36].mxu0  ;;  %v1178_v41 = vpop.f32.mrb[36].mxu1 }
 0x5fd   :  { %v1185_v43 = vadd.f32 %v1137_v40, %v2552_v42  ;;  %v1187_v47 = vadd.f32 %v1178_v41, %v2553_v46  ;;  %v1139_v49 = vpop.f32.mrb[37].mxu0  ;;  %v1180_v50 = vpop.f32.mrb[37].mxu1  ;;  %v1722_v40 = vld [vmem:[%s2518_s2 + $0xe8] ss:$16 sps:$4 sm:$0xff]  }
 0x5fe   :  { %v1186_v52 = vadd.f32 %v1139_v49, %v2554_v51  ;;  %v1188_v54 = vadd.f32 %v1180_v50, %v2555_v53  ;;  %v1141_v57 = vpop.f32.mrb[38].mxu0  ;;  %v1182_v58 = vpop.f32.mrb[38].mxu1 }
 0x5ff   :  { %v1189_v60 = vmul.f32 0.5, %v1185_v43  ;;  %v1142_v61 = vpop.f32.mrb[39].mxu0  ;;  %v1183_v62 = vpop.f32.mrb[39].mxu1  ;;  %v2556_v43 = vld [vmem:[#allocation15_spill] sm:$0xff] }
 0x600   :  { %v1193_v63 = vmul.f32 0.5, %v1186_v52  ;;  %v1198_v0 = vmul.f32 0.5, %v1188_v54  ;;  %v2558_v52 = vld [vmem:[#allocation17_spill] sm:$0xff]  ;;  %v2559_v54 = vld [vmem:[#allocation18_spill] sm:$0xff] }
 0x601   :  { %1661 = vtanh.f32 %v1189_v60 }
 0x602   :  { %1663 = vtanh.f32 %v1193_v63 }
 0x603   :  { %1665 = vtanh.f32 %v1187_v47  ;;  %v2557_v47 = vld [vmem:[#allocation16_spill] sm:$0xff] }
 0x604   :  { %1667 = vtanh.f32 %v1198_v0 }
 0x60b   :  { %v1662_v2 = vpop.eup %1661 }
 0x60c   :  { %v1664_v5 = vpop.eup %1663  ;;  %v1191_v6 = vmul.f32 0.5, %v1662_v2 }
 0x60d   :  { %v1195_v8 = vmul.f32 0.5, %v1664_v5  ;;  %v1666_v10 = vpop.eup %1665 }
 0x60e   :  { %v1192_v9 = vadd.f32 0.5, %v1191_v6  ;;  %v1668_v44 = vpop.eup %1667 }
 0x60f   :  { %v1196_v11 = vadd.f32 0.5, %v1195_v8  ;;  %v1200_v17 = vmul.f32 0.5, %v1668_v44 }
 0x610   :  { %v1203_v12 = vmul.f32 %v1666_v10, %v1192_v9 }
 0x611   :  { %v1202_v13 = vmul.f32 %v1196_v11, %v2349_v1  ;;  %v1201_v18 = vadd.f32 0.5, %v1200_v17  ;;  %v1713_v1 = vld [vmem:[%s2518_s2 + $0xa0] ss:$16 sps:$4 sm:$0xff]  }
 0x613   :  { %v2398_v59 = vadd.f32 %v1203_v12, %v1202_v13 }
 0x615   :  { %1669 = vtanh.f32 %v2398_v59 }
 0x61f   :  { %v1670_v30 = vpop.eup %1669 }
 0x620   :  { %v1206_v19 = vmul.f32 %v1670_v30, %v1201_v18 }
 0x622   :  { %1510 = vst [vmem:[%s2520_s3 + $0x28] sm:$0xff] %v1206_v19  ;;  %v1209_v33 = vpack.c.bf16 %v1206_v19, %v1206_v19 }
 0x624   :  { %1243 = vmatmul.mubr.bf16.vlgmr.msra.gmra.mrb[40].mxu0 %v1209_v33  ;;  %1284 = vmatmul.mubr.bf16.vlgmr.msra.gmra.mrb[40].mxu1 %v1209_v33 }
 0x625   :  { %1318 = vmatpush1.bf16.msra.mxu0 %v1693_v20  ;;  %1359 = vmatpush1.bf16.msra.mxu1 %v1694_v31 }
 0x626   :  { %1319 = vmatprep.subr.bf16.mxu0 %v1695_v34  ;;  %1360 = vmatprep.subr.bf16.mxu1 %v1696_v23 }
 0x627   :  { %1349 = vmatprep.mubr.bf16.mxu0 %v2544_v28  ;;  %1390 = vmatprep.mubr.bf16.mxu1 %v2544_v28  ;;  %v1701_v28 = vld [vmem:[%s2518_s2 + $0x40] ss:$16 sps:$4 sm:$0xff]  }
 0x629   :  { %1320 = vmatpush1.bf16.msra.mxu0 %v1697_v21  ;;  %1361 = vmatpush1.bf16.msra.mxu1 %v1698_v24  ;;  %v2560_v21 = vld [vmem:[#allocation19_spill] sm:$0xff] }
 0x62a   :  { %1321 = vmatprep.subr.bf16.mxu0 %v1699_v37  ;;  %1362 = vmatprep.subr.bf16.mxu1 %v1700_v27  ;;  %v2561_v37 = vld [vmem:[#allocation20_spill] sm:$0xff] }
 0x62d   :  { %1322 = vmatpush1.bf16.msra.mxu0 %v1701_v28  ;;  %1363 = vmatpush1.bf16.msra.mxu1 %v1702_v35  ;;  %v2562_v35 = vld [vmem:[#allocation21_spill] sm:$0xff] }
 0x62e   :  { %1323 = vmatprep.subr.bf16.mxu0 %v1703_v36  ;;  %1364 = vmatprep.subr.bf16.mxu1 %v1704_v22  ;;  %v2563_v22 = vld [vmem:[#allocation22_spill] sm:$0xff] }
 0x631   :  { %1324 = vmatpush1.bf16.msra.mxu0 %v1705_v25  ;;  %1365 = vmatpush1.bf16.msra.mxu1 %v1706_v29 }
 0x632   :  { %1325 = vmatprep.subr.bf16.mxu0 %v1707_v26  ;;  %1366 = vmatprep.subr.bf16.mxu1 %v1708_v48 }
 0x635   :  { %1326 = vmatpush1.bf16.msra.mxu0 %v1709_v55  ;;  %1367 = vmatpush1.bf16.msra.mxu1 %v1710_v56 }
 0x636   :  { %1327 = vmatprep.subr.bf16.mxu0 %v1711_v32  ;;  %1368 = vmatprep.subr.bf16.mxu1 %v1712_v3 }
 0x639   :  { %1328 = vmatpush1.bf16.msra.mxu0 %v1713_v1  ;;  %1369 = vmatpush1.bf16.msra.mxu1 %v1714_v4 }
 0x63a   :  { %1329 = vmatprep.subr.bf16.mxu0 %v1715_v7  ;;  %1370 = vmatprep.subr.bf16.mxu1 %v1716_v14 }
 0x63d   :  { %1330 = vmatpush1.bf16.msra.mxu0 %v1717_v45  ;;  %1371 = vmatpush1.bf16.msra.mxu1 %v1718_v15 }
 0x63e   :  { %1331 = vmatprep.subr.bf16.mxu0 %v1719_v16  ;;  %1372 = vmatprep.subr.bf16.mxu1 %v1720_v38 }
 0x641   :  { %1332 = vmatpush1.bf16.msra.mxu0 %v1721_v39  ;;  %1373 = vmatpush1.bf16.msra.mxu1 %v1722_v40 }
 0x6f7   :  { %v1244_v41 = vpop.f32.mrb[40].mxu0  ;;  %v1285_v42 = vpop.f32.mrb[40].mxu1 }
 0x6f8   :  { %v1292_v46 = vadd.f32 %v1244_v41, %v2556_v43  ;;  %v1294_v49 = vadd.f32 %v1285_v42, %v2557_v47  ;;  %v1246_v50 = vpop.f32.mrb[41].mxu0  ;;  %v1287_v51 = vpop.f32.mrb[41].mxu1 }
 0x6f9   :  { %v1293_v53 = vadd.f32 %v1246_v50, %v2558_v52  ;;  %v1295_v57 = vadd.f32 %v1287_v51, %v2559_v54  ;;  %v1248_v58 = vpop.f32.mrb[42].mxu0  ;;  %v1289_v60 = vpop.f32.mrb[42].mxu1 }
 0x6fa   :  { %v1296_v61 = vmul.f32 0.5, %v1292_v46  ;;  %v1249_v62 = vpop.f32.mrb[43].mxu0  ;;  %v1290_v63 = vpop.f32.mrb[43].mxu1 }
 0x6fb   :  { %v1300_v0 = vmul.f32 0.5, %v1293_v53  ;;  %v1305_v2 = vmul.f32 0.5, %v1295_v57 }
 0x6fc   :  { %1671 = vtanh.f32 %v1296_v61 }
 0x6fd   :  { %1673 = vtanh.f32 %v1300_v0 }
 0x6fe   :  { %1675 = vtanh.f32 %v1294_v49 }
 0x6ff   :  { %1677 = vtanh.f32 %v1305_v2 }
 0x706   :  { %v1672_v5 = vpop.eup %1671 }
 0x707   :  { %v1674_v6 = vpop.eup %1673  ;;  %v1298_v8 = vmul.f32 0.5, %v1672_v5 }
 0x708   :  { %v1302_v9 = vmul.f32 0.5, %v1674_v6  ;;  %v1676_v11 = vpop.eup %1675 }
 0x709   :  { %v1299_v10 = vadd.f32 0.5, %v1298_v8  ;;  %v1678_v18 = vpop.eup %1677 }
 0x70a   :  { %v1303_v12 = vadd.f32 0.5, %v1302_v9  ;;  %v1307_v30 = vmul.f32 0.5, %v1678_v18 }
 0x70b   :  { %v1310_v13 = vmul.f32 %v1676_v11, %v1299_v10 }
 0x70c   :  { %v1309_v44 = vmul.f32 %v1303_v12, %v2398_v59  ;;  %v1308_v19 = vadd.f32 0.5, %v1307_v30 }
 0x70e   :  { %v1311_v17 = vadd.f32 %v1310_v13, %v1309_v44 }
 0x710   :  { %1679 = vtanh.f32 %v1311_v17 }
 0x71a   :  { %v1680_v33 = vpop.eup %1679 }
 0x71b   :  { %v1313_v20 = vmul.f32 %v1680_v33, %v1308_v19 }
 0x71d   :  { %1511 = vst [vmem:[%s2520_s3 + $0x30] sm:$0xff] %v1313_v20  ;;  %v1316_v31 = vpack.c.bf16 %v1313_v20, %v1313_v20 }
 0x71f   :  { %1350 = vmatmul.mubr.bf16.vlgmr.msra.gmra.mrb[44].mxu0 %v1316_v31  ;;  %1391 = vmatmul.mubr.bf16.vlgmr.msra.gmra.mrb[44].mxu1 %v1316_v31 }
 0x7f2   :  { %v1351_v34 = vpop.f32.mrb[44].mxu0  ;;  %v1392_v23 = vpop.f32.mrb[44].mxu1 }
 0x7f3   :  { %v1399_v24 = vadd.f32 %v1351_v34, %v2560_v21  ;;  %v1401_v59 = vadd.f32 %v1392_v23, %v2561_v37  ;;  %v1353_v27 = vpop.f32.mrb[45].mxu0  ;;  %v1394_v28 = vpop.f32.mrb[45].mxu1 }
 0x7f4   :  { %v1400_v36 = vadd.f32 %v1353_v27, %v2562_v35  ;;  %v1402_v25 = vadd.f32 %v1394_v28, %v2563_v22  ;;  %v1355_v29 = vpop.f32.mrb[46].mxu0  ;;  %v1396_v26 = vpop.f32.mrb[46].mxu1 }
 0x7f5   :  { %v1403_v48 = vmul.f32 0.5, %v1399_v24  ;;  %v1356_v55 = vpop.f32.mrb[47].mxu0  ;;  %v1397_v56 = vpop.f32.mrb[47].mxu1 }
 0x7f6   :  { %v1407_v32 = vmul.f32 0.5, %v1400_v36  ;;  %v1412_v3 = vmul.f32 0.5, %v1402_v25 }
 0x7f7   :  { %1681 = vtanh.f32 %v1403_v48 }
 0x7f8   :  { %1683 = vtanh.f32 %v1407_v32 }
 0x7f9   :  { %1685 = vtanh.f32 %v1401_v59 }
 0x7fa   :  { %1687 = vtanh.f32 %v1412_v3 }
 0x801   :  { %v1682_v1 = vpop.eup %1681 }
 0x802   :  { %v1684_v4 = vpop.eup %1683  ;;  %v1405_v7 = vmul.f32 0.5, %v1682_v1 }
 0x803   :  { %v1409_v14 = vmul.f32 0.5, %v1684_v4  ;;  %v1686_v15 = vpop.eup %1685 }
 0x804   :  { %v1406_v45 = vadd.f32 0.5, %v1405_v7  ;;  %v1688_v41 = vpop.eup %1687 }
 0x805   :  { %v1410_v16 = vadd.f32 0.5, %v1409_v14  ;;  %v1414_v42 = vmul.f32 0.5, %v1688_v41 }
 0x806   :  { %v1417_v38 = vmul.f32 %v1686_v15, %v1406_v45 }
 0x807   :  { %v1416_v39 = vmul.f32 %v1410_v16, %v1311_v17  ;;  %v1415_v43 = vadd.f32 0.5, %v1414_v42 }
 0x809   :  { %v1418_v40 = vadd.f32 %v1417_v38, %v1416_v39 }
 0x80b   :  { %1689 = vtanh.f32 %v1418_v40  ;;  %1429 = vst [vmem:[%s2521_s5] sm:$0xff] %v1418_v40 }
 0x815   :  { %v1690_v46 = vpop.eup %1689 }
 0x816   :  { %v1420_v47 = vmul.f32 %v1690_v46, %v1415_v43 }
 0x818   :  { %1512 = vst [vmem:[%s2520_s3 + $0x38] sm:$0xff] %v1420_v47  ;;  %1428 = vst [vmem:[%s2522_s4] sm:$0xff] %v1420_v47 }

</bundles_post_ra>
